<compile_context>
chip_gen: v7x
topology: tpu7x:2x2x1
jax: 0.10.0
libtpu: 0.0.40
codegen_flags: <defaults>
</compile_context>

<pallas_src>
import functools

import jax
import jax.numpy as jnp
from jax import lax
from jax.experimental import pallas as pl
from jax.experimental.pallas import tpu as pltpu


# -----------------------------------------------------------------------------
# Generation-aware VMEM sizing
# -----------------------------------------------------------------------------
@functools.lru_cache(maxsize=None)
def _vmem_budget():
    cap = 64 * 1024 * 1024
    try:
        info = pltpu.get_tpu_info()
        cap = int(getattr(info, "vmem_capacity_bytes", cap)) or cap
    except Exception:
        pass
    cap = max(cap, 32 * 1024 * 1024)
    limit = max(32 * 1024 * 1024, min(int(cap * 0.8), cap - (8 << 20)))
    budget = max(16 * 1024 * 1024, limit // 2)
    return budget, limit


def _pick_cout_block(KH, KW, Cin, cout_pad, budget):
    """Cout tile: multiple of 128 dividing cout_pad, weight double-buffer bounded."""
    for blk in (512, 256, 128):
        if cout_pad % blk == 0 and 2 * (KH * KW * Cin * blk * 2) <= budget // 3:
            return blk
    return 128


def _pick_row_tile(Ho, Wp, Wo, KH, KW, Cin, co_blk, has_res, out_bytes, budget,
                   row_tile):
    """Output-row tile R (multiple of the halo KH-1) sized to the VMEM budget."""
    g = max(KH - 1, 1)
    if row_tile is None:
        fixed = (2 * KH * KW * Cin * co_blk * 2          # weights (dbl buffered)
                 + 2 * (KH - 1) * Wp * Cin * 2 * 2)      # halo view (dbl buffered)
        per_row = (2 * Wp * Cin * 2                      # main input (dbl buffered)
                   + Wp * Cin * 2                        # in-kernel halo concat copy
                   + 2 * Wo * Cin * 2                    # im2col patch temporaries
                   + Wo * co_blk * (4 + 2 * out_bytes + (4 if has_res else 0)))
        row_tile = max(g, (budget - fixed) // max(per_row, 1))
    R = max(g, (int(row_tile) // g) * g)
    Ho_g = -(-Ho // g) * g
    R = min(R, Ho_g)
    n_r = -(-Ho // R)
    return R, n_r


# -----------------------------------------------------------------------------
# Pallas conv kernel: stride-1 valid conv over a pre-padded NHWC row tile, fused
# with the folded BatchNorm affine, optional residual add and optional ReLU.
# Grid = (N, row_tiles, cout_blocks), all axes "parallel"; the KH*KW tap dots are
# summed into a traced f32 value (single store per output block, no scratch).
# -----------------------------------------------------------------------------
def _make_conv_kernel(KH, KW, R, Wo, relu, has_res, has_halo, out_dtype):
    def kernel(*refs):
        i = 0
        x_ref = refs[i]; i += 1
        h_ref = None
        if has_halo:
            h_ref = refs[i]; i += 1
        w_ref, scale_ref, shift_ref = refs[i], refs[i + 1], refs[i + 2]
        i += 3
        res_ref = None
        if has_res:
            res_ref = refs[i]; i += 1
        o_ref = refs[i]

        x = x_ref[0]                                       # (R, Wp, Cin) bf16
        if h_ref is not None:
            x = jnp.concatenate([x, h_ref[0]], axis=0)     # (R+KH-1, Wp, Cin)
        cin = x.shape[-1]

        acc = None
        for kh in range(KH):
            for kw in range(KW):
                patch = x[kh:kh + R, kw:kw + Wo, :].reshape(R * Wo, cin)
                d = jnp.dot(patch, w_ref[kh, kw],
                            preferred_element_type=jnp.float32)
                acc = d if acc is None else acc + d

        y = acc * scale_ref[...] + shift_ref[...]          # (R*Wo, co_blk) f32
        y = y.reshape(R, Wo, -1)
        if res_ref is not None:
            y = y + res_ref[0].astype(jnp.float32)
        if relu:
            y = jnp.maximum(y, 0.0)
        o_ref[0] = y.astype(out_dtype)

    return kernel


@functools.lru_cache(maxsize=None)
def _build_conv_call(N, Wp, Cin, Cout_pad, KH, KW, R, n_r, co_blk, relu, has_res,
                     out_dtype_name, vmem_limit):
    out_dtype = jnp.dtype(out_dtype_name)
    Wo = Wp - KW + 1
    halo = KH - 1
    n_co = Cout_pad // co_blk

    in_specs = [pl.BlockSpec((1, R, Wp, Cin), lambda n, r, c: (n, r, 0, 0))]
    if halo:
        step = R // halo                       # (KH-1) divides R by construction
        in_specs.append(
            pl.BlockSpec((1, halo, Wp, Cin),
                         lambda n, r, c: (n, (r + 1) * step, 0, 0)))
    in_specs += [
        pl.BlockSpec((KH, KW, Cin, co_blk), lambda n, r, c: (0, 0, 0, c)),
        pl.BlockSpec((1, co_blk), lambda n, r, c: (0, c)),
        pl.BlockSpec((1, co_blk), lambda n, r, c: (0, c)),
    ]
    if has_res:
        in_specs.append(
            pl.BlockSpec((1, R, Wo, co_blk), lambda n, r, c: (n, r, 0, c)))

    return pl.pallas_call(
        _make_conv_kernel(KH, KW, R, Wo, relu, has_res, halo > 0, out_dtype),
        out_shape=jax.ShapeDtypeStruct((N, n_r * R, Wo, Cout_pad), out_dtype),
        grid_spec=pltpu.PrefetchScalarGridSpec(
            num_scalar_prefetch=0,
            grid=(N, n_r, n_co),
            in_specs=in_specs,
            out_specs=pl.BlockSpec((1, R, Wo, co_blk), lambda n, r, c: (n, r, 0, c)),
        ),
        compiler_params=pltpu.CompilerParams(
            dimension_semantics=("parallel", "parallel", "parallel"),
            vmem_limit_bytes=vmem_limit,
        ),
    )


def _conv_s1(x, w, scale, shift, *, padding, relu, residual, out_dtype, row_tile):
    """Stride-1 conv + folded BN (+residual) (+ReLU).  x NHWC bf16, w HWIO bf16."""
    x = x.astype(jnp.bfloat16)
    w = w.astype(jnp.bfloat16)
    N, H, W, Cin = x.shape
    KH, KW, _, Cout = w.shape
    Ho = H + 2 * padding - KH + 1
    Wo = W + 2 * padding - KW + 1
    Wp = W + 2 * padding
    out_dt = jnp.dtype(out_dtype)

    budget, vmem_limit = _vmem_budget()
    Cout_pad = max(128, -(-Cout // 128) * 128)             # lane-dense outputs
    co_blk = _pick_cout_block(KH, KW, Cin, Cout_pad, budget)
    R, n_r = _pick_row_tile(Ho, Wp, Wo, KH, KW, Cin, co_blk,
                            residual is not None, out_dt.itemsize, budget, row_tile)
    Ho_pad = n_r * R
    Hp_pad = Ho_pad + KH - 1
    pad_bot = Hp_pad - (H + 2 * padding)
    xp = jnp.pad(x, ((0, 0), (padding, padding + pad_bot), (padding, padding),
                     (0, 0)))

    scale = jnp.asarray(scale, jnp.float32).reshape(-1)
    shift = jnp.asarray(shift, jnp.float32).reshape(-1)
    if Cout_pad > Cout:
        w = jnp.pad(w, ((0, 0), (0, 0), (0, 0), (0, Cout_pad - Cout)))
        scale = jnp.pad(scale, (0, Cout_pad - Cout))
        shift = jnp.pad(shift, (0, Cout_pad - Cout))

    args = [xp]
    if KH > 1:
        args.append(xp)        # second (halo) view of the same padded activation
    args += [w, scale.reshape(1, Cout_pad), shift.reshape(1, Cout_pad)]
    if residual is not None:
        res = residual.astype(jnp.bfloat16)
        if Ho_pad > Ho or Cout_pad > Cout:
            res = jnp.pad(res, ((0, 0), (0, Ho_pad - Ho), (0, 0),
                                (0, Cout_pad - Cout)))
        args.append(res)

    call = _build_conv_call(N, Wp, Cin, Cout_pad, KH, KW, R, n_r, co_blk, relu,
                            residual is not None, out_dt.name, vmem_limit)
    out = call(*args)
    if Ho_pad > Ho or Cout_pad > Cout:
        out = out[:, :Ho, :, :Cout]
    return out


# -----------------------------------------------------------------------------
# Stride folding (wrapper-side layout glue: strided convs become stride-1 convs)
# TODO(synk): these relayouts still materialize the rearranged activation in HBM;
#             folding the phase views into separate BlockSpecs would avoid that.
# -----------------------------------------------------------------------------
def _im2col_strided(xp, w, s):
    """Full im2col of a strided conv: -> 1x1 conv over KH*KW*Cin channels."""
    KH, KW, Cin, Cout = w.shape
    _, Hp, Wp, _ = xp.shape
    Ho = (Hp - KH) // s + 1
    Wo = (Wp - KW) // s + 1
    cols = [xp[:, kh::s, kw::s, :][:, :Ho, :Wo, :]
            for kh in range(KH) for kw in range(KW)]
    xc = jnp.concatenate(cols, axis=-1)
    wc = w.reshape(1, 1, KH * KW * Cin, Cout)
    return xc, wc


def _polyphase_strided(xp, w, s):
    """Space-to-depth: strided KxK conv -> stride-1 ceil(K/s) conv over s*s*Cin ch."""
    KH, KW, Cin, Cout = w.shape
    _, Hp, Wp, _ = xp.shape
    KH2, KW2 = -(-KH // s), -(-KW // s)
    Ho = (Hp - KH) // s + 1
    Wo = (Wp - KW) // s + 1
    Hq, Wq = Ho + KH2 - 1, Wo + KW2 - 1
    xs, ws = [], []
    for ph in range(s):
        for pw in range(s):
            p = xp[:, ph::s, pw::s, :][:, :Hq, :Wq, :]
            padh, padw = Hq - p.shape[1], Wq - p.shape[2]
            if padh or padw:
                p = jnp.pad(p, ((0, 0), (0, padh), (0, padw), (0, 0)))
            xs.append(p)
            rows = []
            for a in range(KH2):
                cols = []
                for b in range(KW2):
                    kh, kw = s * a + ph, s * b + pw
                    if kh < KH and kw < KW:
                        cols.append(w[kh, kw])
                    else:
                        cols.append(jnp.zeros((Cin, Cout), w.dtype))
                rows.append(jnp.stack(cols, axis=0))
            ws.append(jnp.stack(rows, axis=0))
    xq = jnp.concatenate(xs, axis=-1)
    wq = jnp.concatenate(ws, axis=2)
    return xq, wq


def conv2d_bn_act(x, w, scale, shift, *, stride=1, padding=0, relu=True,
                  residual=None, out_dtype=jnp.bfloat16, row_tile=None):
    """Equivalent to act(BN(conv2d(x, w, stride, padding)) [+ residual]) in NHWC."""
    assert residual is None or stride == 1
    KH, KW, Cin, _ = w.shape
    x = x.astype(jnp.bfloat16)
    w = w.astype(jnp.bfloat16)
    if stride > 1:
        xp = jnp.pad(x, ((0, 0), (padding, padding), (padding, padding), (0, 0)))
        if KH == 1 and KW == 1:
            x1, w1 = xp[:, ::stride, ::stride, :], w
        elif KH * KW * Cin <= 512:                      # small-Cin (stem) -> im2col
            x1, w1 = _im2col_strided(xp, w, stride)
        else:                                           # big-Cin -> polyphase
            x1, w1 = _polyphase_strided(xp, w, stride)
        return _conv_s1(x1, w1, scale, shift, padding=0, relu=relu,
                        residual=residual, out_dtype=out_dtype, row_tile=row_tile)
    return _conv_s1(x, w, scale, shift, padding=padding, relu=relu,
                    residual=residual, out_dtype=out_dtype, row_tile=row_tile)


# -----------------------------------------------------------------------------
# Row-tiled strided max-pool: each stride phase is supplied twice (main rows +
# 1-row halo view); only the strided output positions are computed / written.
# -----------------------------------------------------------------------------
def _make_pool_kernel(K, s, R, Wo):
    def kernel(*refs):
        n_ph = s * s
        phases = []
        for i in range(n_ph):
            m = refs[2 * i][0]
            h = refs[2 * i + 1][0]
            phases.append(jnp.concatenate([m, h], axis=0))     # (R+1, Wq, C)
        o_ref = refs[2 * n_ph]
        out = None
        for kh in range(K):
            for kw in range(K):
                v = phases[(kh % s) * s + (kw % s)]
                a, b = kh // s, kw // s
                t = v[a:a + R, b:b + Wo, :]
                out = t if out is None else jnp.maximum(out, t)
        o_ref[0] = out

    return kernel


@functools.lru_cache(maxsize=None)
def _build_pool_call(N, Wq, C, K, s, R, n_r, Wo, dtype_name, vmem_limit):
    dtype = jnp.dtype(dtype_name)
    halo = -(-K // s) - 1                     # == 1 for the 3x3/s2 ResNet pool
    in_specs = []
    for _ in range(s * s):
        in_specs.append(pl.BlockSpec((1, R, Wq, C), lambda n, r: (n, r, 0, 0)))
        in_specs.append(pl.BlockSpec((1, halo, Wq, C),
                                     lambda n, r: (n, (r + 1) * (R // halo), 0, 0)))
    return pl.pallas_call(
        _make_pool_kernel(K, s, R, Wo),
        out_shape=jax.ShapeDtypeStruct((N, n_r * R, Wo, C), dtype),
        grid_spec=pltpu.PrefetchScalarGridSpec(
            num_scalar_prefetch=0,
            grid=(N, n_r),
            in_specs=in_specs,
            out_specs=pl.BlockSpec((1, R, Wo, C), lambda n, r: (n, r, 0, 0)),
        ),
        compiler_params=pltpu.CompilerParams(
            dimension_semantics=("parallel", "parallel"),
            vmem_limit_bytes=vmem_limit,
        ),
    )


def maxpool2d(x, *, kernel_size=3, stride=2, padding=1):
    N, H, W, C = x.shape
    K, s = kernel_size, stride
    assert K > s
    neg = float(jnp.finfo(x.dtype).min)
    xp = jnp.pad(x, ((0, 0), (padding, padding), (padding, padding), (0, 0)),
                 constant_values=neg)
    Hp, Wp = H + 2 * padding, W + 2 * padding
    Ho = (Hp - K) // s + 1
    Wo = (Wp - K) // s + 1
    K2 = -(-K // s)
    halo = K2 - 1
    Wq = Wo + K2 - 1

    budget, vmem_limit = _vmem_budget()
    item = jnp.dtype(x.dtype).itemsize
    per_row = s * s * 3 * Wq * C * item + 2 * Wo * C * item
    R = max(1, min(Ho, budget // max(per_row, 1)))
    n_r = -(-Ho // R)
    Hq_pad = n_r * R + halo

    args = []
    for ph in range(s):
        for pw in range(s):
            p = xp[:, ph::s, pw::s, :][:, :Hq_pad, :Wq, :]
            padh, padw = Hq_pad - p.shape[1], Wq - p.shape[2]
            if padh or padw:
                p = jnp.pad(p, ((0, 0), (0, padh), (0, padw), (0, 0)),
                            constant_values=neg)
            args += [p, p]                  # main view + halo view of the phase

    call = _build_pool_call(N, Wq, C, K, s, R, n_r, Wo,
                            jnp.dtype(x.dtype).name, vmem_limit)
    out = call(*args)
    if n_r * R > Ho:
        out = out[:, :Ho]
    return out


def _upsample_nearest_2x(x):        # glue: F.interpolate(scale_factor=2, "nearest")
    return jnp.repeat(jnp.repeat(x, 2, axis=1), 2, axis=2)


# -----------------------------------------------------------------------------
# Deterministic synthetic parameters (ResNet50 encoder + Unet decoder + head)
# -----------------------------------------------------------------------------
def _he_conv(key, kh, kw, cin, cout):
    fan_in = kh * kw * cin
    return jnp.sqrt(2.0 / fan_in) * jax.random.normal(key, (kh, kw, cin, cout),
                                                      jnp.float32)


def _bn_fold(key, c, eps=1e-5):
    k1, k2, k3, k4 = jax.random.split(key, 4)
    gamma = 1.0 + 0.1 * jax.random.normal(k1, (c,), jnp.float32)
    beta = 0.1 * jax.random.normal(k2, (c,), jnp.float32)
    mean = 0.1 * jax.random.normal(k3, (c,), jnp.float32)
    var = jnp.abs(1.0 + 0.1 * jax.random.normal(k4, (c,), jnp.float32))
    scale = gamma * lax.rsqrt(var + eps)
    shift = beta - mean * scale
    return scale, shift


class _KeyGen:
    def __init__(self, key):
        self._key = key
        self._i = 0

    def __call__(self):
        self._i += 1
        return jax.random.fold_in(self._key, self._i)


def init_abdomen_seg_params(key, num_segments, in_channels=3):
    kg = _KeyGen(key)

    def conv_bn(kh, kw, cin, cout):
        scale, shift = _bn_fold(kg(), cout)
        return dict(w=_he_conv(kg(), kh, kw, cin, cout), scale=scale, shift=shift)

    params = {}
    params["stem"] = conv_bn(7, 7, in_channels, 64)          # 7x7/2 conv + BN + ReLU

    layers = []
    cin = 64
    for planes, blocks in zip((64, 128, 256, 512), (3, 4, 6, 3)):
        layer = []
        for b in range(blocks):
            in_c = cin if b == 0 else planes * 4
            blk = dict(conv1=conv_bn(1, 1, in_c, planes),
                       conv2=conv_bn(3, 3, planes, planes),
                       conv3=conv_bn(1, 1, planes, planes * 4))
            if b == 0:
                blk["downsample"] = conv_bn(1, 1, in_c, planes * 4)
            layer.append(blk)
        layers.append(layer)
        cin = planes * 4
    params["layers"] = layers

    enc_ch = (in_channels, 64, 256, 512, 1024, 2048)
    dec_ch = (256, 128, 64, 32, 16)
    in_chs = (enc_ch[-1],) + dec_ch[:-1]
    skip_chs = (enc_ch[4], enc_ch[3], enc_ch[2], enc_ch[1], 0)
    decoder = []
    for ic, sc, oc in zip(in_chs, skip_chs, dec_ch):
        decoder.append(dict(conv1=conv_bn(3, 3, ic + sc, oc),
                            conv2=conv_bn(3, 3, oc, oc)))
    params["decoder"] = decoder

    params["head"] = dict(
        w=_he_conv(kg(), 3, 3, dec_ch[-1], num_segments),
        scale=jnp.ones((num_segments,), jnp.float32),
        shift=0.01 * jax.random.normal(kg(), (num_segments,), jnp.float32),
    )
    return params


# -----------------------------------------------------------------------------
# Forward pass (mirrors AbdomenSegModel.forward / smp.Unet(resnet50))
# -----------------------------------------------------------------------------
def abdomen_seg_forward(params, x_nchw):
    """(N, C, H, W) -> (N, num_segments, H, W), H and W multiples of 32."""
    N, C, H, W = x_nchw.shape
    assert H % 32 == 0 and W % 32 == 0
    x = jnp.transpose(x_nchw, (0, 2, 3, 1)).astype(jnp.bfloat16)   # NCHW -> NHWC

    def cba(p, h, **kw):
        return conv2d_bn_act(h, p["w"], p["scale"], p["shift"], **kw)

    # -------- ResNet50 encoder --------
    f1 = cba(params["stem"], x, stride=2, padding=3, relu=True)          # H/2,  64
    h = maxpool2d(f1, kernel_size=3, stride=2, padding=1)                # H/4,  64

    feats = []
    for li, layer in enumerate(params["layers"]):
        layer_stride = 1 if li == 0 else 2
        for bi, blk in enumerate(layer):
            stride = layer_stride if bi == 0 else 1
            if bi == 0:
                identity = cba(blk["downsample"], h, stride=stride, padding=0,
                               relu=False)
            else:
                identity = h
            t = cba(blk["conv1"], h, stride=1, padding=0, relu=True)
            t = cba(blk["conv2"], t, stride=stride, padding=1, relu=True)
            h = cba(blk["conv3"], t, stride=1, padding=0, relu=True,
                    residual=identity)
        feats.append(h)
    f2, f3, f4, f5 = feats              # strides 4, 8, 16, 32

    # -------- Unet decoder --------
    # TODO(synk): skip-concat / 2x nearest upsample are XLA-side; folding them into
    #             the conv kernel (two Cin-split inputs + r->r//2 index_map) would
    #             remove a full extra read+write of the decoder activations.
    skips = [f4, f3, f2, f1, None]
    d = f5
    for blk, skip in zip(params["decoder"], skips):
        d = _upsample_nearest_2x(d)
        if skip is not None:
            d = jnp.concatenate([d, skip], axis=-1)
        d = cba(blk["conv1"], d, stride=1, padding=1, relu=True)
        d = cba(blk["conv2"], d, stride=1, padding=1, relu=True)

    # -------- segmentation head --------
    logits = cba(params["head"], d, stride=1, padding=1, relu=False,
                 out_dtype=jnp.float32)
    return jnp.transpose(logits, (0, 3, 1, 2))                    # NHWC -> NCHW


# -----------------------------------------------------------------------------
# Self-checks of the Pallas kernels against lax references (bf16-rounded inputs)
# -----------------------------------------------------------------------------
def _self_check():
    ks = jax.random.split(jax.random.PRNGKey(42), 10)

    def ref_conv(x, w, scale, shift, stride, padding, relu, residual=None):
        xb = x.astype(jnp.bfloat16).astype(jnp.float32)
        wb = w.astype(jnp.bfloat16).astype(jnp.float32)
        y = lax.conv_general_dilated(
            xb, wb, (stride, stride), ((padding, padding), (padding, padding)),
            dimension_numbers=("NHWC", "HWIO", "NHWC"),
            precision=lax.Precision.HIGHEST)
        y = y * scale + shift
        if residual is not None:
            y = y + residual.astype(jnp.bfloat16).astype(jnp.float32)
        if relu:
            y = jnp.maximum(y, 0.0)
        return y

    def check(got, ref, tol, name):
        err = float(jnp.max(jnp.abs(got.astype(jnp.float32) - ref)))
        assert got.shape == ref.shape and err < tol, (name, got.shape, ref.shape, err)

    # (a) 3x3 / stride 2 / pad 1 -> polyphase path + halo view + Cout padding
    x = jax.random.normal(ks[0], (2, 8, 8, 256), jnp.float32)
    w = 0.1 * jax.random.normal(ks[1], (3, 3, 256, 32), jnp.float32)
    sc = 1.0 + 0.1 * jax.random.normal(ks[2], (32,), jnp.float32)
    sh = 0.1 * jax.random.normal(ks[3], (32,), jnp.float32)
    got = conv2d_bn_act(x, w, sc, sh, stride=2, padding=1, relu=True,
                        out_dtype=jnp.float32)
    check(got, ref_conv(x, w, sc, sh, 2, 1, True), 2e-2, "polyphase")

    # (b) 7x7 / stride 2 / pad 3, Cin=3 -> im2col (stem) path
    x = jax.random.normal(ks[4], (1, 16, 16, 3), jnp.float32)
    w = 0.1 * jax.random.normal(ks[5], (7, 7, 3, 64), jnp.float32)
    sc = jnp.ones((64,), jnp.float32)
    sh = jnp.zeros((64,), jnp.float32)
    got = conv2d_bn_act(x, w, sc, sh, stride=2, padding=3, relu=True,
                        out_dtype=jnp.float32)
    check(got, ref_conv(x, w, sc, sh, 2, 3, True), 2e-2, "im2col-stem")

    # (c) 3x3 / stride 1 / pad 1, residual, forced small row tile (halo + crop)
    x = jax.random.normal(ks[6], (1, 10, 12, 16), jnp.float32)
    w = 0.1 * jax.random.normal(ks[7], (3, 3, 16, 24), jnp.float32)
    res = jax.random.normal(ks[8], (1, 10, 12, 24), jnp.float32)
    sc = jnp.ones((24,), jnp.float32)
    sh = jnp.zeros((24,), jnp.float32)
    got = conv2d_bn_act(x, w, sc, sh, stride=1, padding=1, relu=True,
                        residual=res, out_dtype=jnp.float32, row_tile=4)
    check(got, ref_conv(x, w, sc, sh, 1, 1, True, residual=res), 2e-2, "rowtile")

    # (d) 1x1 / stride 2 downsample path
    x = jax.random.normal(ks[9], (2, 8, 8, 32), jnp.float32)
    w = 0.1 * jax.random.normal(ks[1], (1, 1, 32, 48), jnp.float32)
    sc = jnp.ones((48,), jnp.float32)
    sh = jnp.zeros((48,), jnp.float32)
    got = conv2d_bn_act(x, w, sc, sh, stride=2, padding=0, relu=False,
                        out_dtype=jnp.float32)
    check(got, ref_conv(x, w, sc, sh, 2, 0, False), 2e-2, "downsample")

    # (e) row-tiled strided max-pool
    xb = jax.random.normal(ks[2], (2, 16, 16, 64), jnp.float32).astype(jnp.bfloat16)
    got = maxpool2d(xb, kernel_size=3, stride=2, padding=1).astype(jnp.float32)
    ref = lax.reduce_window(xb.astype(jnp.float32), -jnp.inf, lax.max,
                            (1, 3, 3, 1), (1, 2, 2, 1),
                            ((0, 0), (1, 1), (1, 1), (0, 0)))
    check(got, ref, 1e-6, "maxpool")


if __name__ == "__main__":
    _self_check()

    key = jax.random.PRNGKey(0)
    kp, kx = jax.random.split(key)
    num_segments = 4

    params = init_abdomen_seg_params(kp, num_segments=num_segments, in_channels=3)
    x = jax.random.normal(kx, (2, 3, 32, 32), jnp.float32)   # N,C,H,W (H,W % 32 == 0)

    fwd = jax.jit(abdomen_seg_forward)
    out = jax.block_until_ready(fwd(params, x))

    assert out.shape == (2, num_segments, 32, 32), out.shape
    assert bool(jnp.all(jnp.isfinite(out)))
    print("KERNEL_OK")
</pallas_src>

<mosaic_0001>
module attributes {stable_mosaic.version = 11 : i64} {
  func.func @kernel(%arg0: i32, %arg1: i32, %arg2: i32, %arg3: memref<1x4x5x1024xbf16, #tpu.memory_space<vmem>>, %arg4: memref<1x1x5x1024xbf16, #tpu.memory_space<vmem>>, %arg5: memref<2x2x1024x128xbf16, #tpu.memory_space<vmem>>, %arg6: memref<1x128xf32, #tpu.memory_space<vmem>>, %arg7: memref<1x128xf32, #tpu.memory_space<vmem>>, %arg8: memref<1x4x4x128xf32, #tpu.memory_space<vmem>>) attributes {dimension_semantics = [#tpu.dimension_semantics<parallel>, #tpu.dimension_semantics<parallel>, #tpu.dimension_semantics<parallel>], iteration_bounds = array<i64: 2, 1, 1>, scalar_prefetch = 0 : i64, scratch_operands = 0 : i64, tpu.core_type = #tpu.core_type<tc>, window_params = [{transform_indices = @transform_0, window_bounds = array<i64: 1, 4, 5, 1024>}, {transform_indices = @transform_1, window_bounds = array<i64: 1, 1, 5, 1024>}, {transform_indices = @transform_2, window_bounds = array<i64: 2, 2, 1024, 128>}, {transform_indices = @transform_3, window_bounds = array<i64: 1, 128>}, {transform_indices = @transform_4, window_bounds = array<i64: 1, 128>}, {transform_indices = @transform_5, window_bounds = array<i64: 1, 4, 4, 128>}]} {
    %c0 = arith.constant 0 : index
    %c0_0 = arith.constant 0 : index
    %c0_1 = arith.constant 0 : index
    %c0_2 = arith.constant 0 : index
    %0 = vector.load %arg3[%c0, %c0_0, %c0_1, %c0_2] : memref<1x4x5x1024xbf16, #tpu.memory_space<vmem>>, vector<1x4x5x1024xbf16>
    %1 = vector.shape_cast %0 : vector<1x4x5x1024xbf16> to vector<4x5x1024xbf16>
    %c0_3 = arith.constant 0 : index
    %c0_4 = arith.constant 0 : index
    %c0_5 = arith.constant 0 : index
    %c0_6 = arith.constant 0 : index
    %2 = vector.load %arg4[%c0_3, %c0_4, %c0_5, %c0_6] : memref<1x1x5x1024xbf16, #tpu.memory_space<vmem>>, vector<1x1x5x1024xbf16>
    %3 = vector.shape_cast %2 : vector<1x1x5x1024xbf16> to vector<1x5x1024xbf16>
    %4 = tpu.concatenate %1, %3 in 0 : vector<4x5x1024xbf16>, vector<1x5x1024xbf16> -> vector<5x5x1024xbf16>
    %5 = vector.extract_strided_slice %4 {offsets = [0, 0, 0], sizes = [4, 4, 1024], strides = [1, 1, 1]} : vector<5x5x1024xbf16> to vector<4x4x1024xbf16>
    %6 = vector.shape_cast %5 : vector<4x4x1024xbf16> to vector<16x1024xbf16>
    %c0_7 = arith.constant 0 : index
    %c0_8 = arith.constant 0 : index
    %c0_9 = arith.constant 0 : index
    %c0_10 = arith.constant 0 : index
    %7 = vector.load %arg5[%c0_7, %c0_8, %c0_9, %c0_10] : memref<2x2x1024x128xbf16, #tpu.memory_space<vmem>>, vector<1x1x1024x128xbf16>
    %8 = vector.shape_cast %7 : vector<1x1x1024x128xbf16> to vector<1024x128xbf16>
    %cst = arith.constant dense<0.000000e+00> : vector<16x128xf32>
    %9 = tpu.matmul %6, %8, %cst {dimension_numbers = #tpu.dot_dimension_numbers<[1], [0], [0], [1], [0, 0, 1, 1], [], []>} : vector<16x1024xbf16>, vector<1024x128xbf16>, vector<16x128xf32> -> vector<16x128xf32>
    %10 = vector.extract_strided_slice %4 {offsets = [0, 1, 0], sizes = [4, 4, 1024], strides = [1, 1, 1]} : vector<5x5x1024xbf16> to vector<4x4x1024xbf16>
    %11 = vector.shape_cast %10 : vector<4x4x1024xbf16> to vector<16x1024xbf16>
    %c0_11 = arith.constant 0 : index
    %c1 = arith.constant 1 : index
    %c0_12 = arith.constant 0 : index
    %c0_13 = arith.constant 0 : index
    %12 = vector.load %arg5[%c0_11, %c1, %c0_12, %c0_13] : memref<2x2x1024x128xbf16, #tpu.memory_space<vmem>>, vector<1x1x1024x128xbf16>
    %13 = vector.shape_cast %12 : vector<1x1x1024x128xbf16> to vector<1024x128xbf16>
    %cst_14 = arith.constant dense<0.000000e+00> : vector<16x128xf32>
    %14 = tpu.matmul %11, %13, %cst_14 {dimension_numbers = #tpu.dot_dimension_numbers<[1], [0], [0], [1], [0, 0, 1, 1], [], []>} : vector<16x1024xbf16>, vector<1024x128xbf16>, vector<16x128xf32> -> vector<16x128xf32>
    %15 = arith.addf %9, %14 : vector<16x128xf32>
    %16 = vector.extract_strided_slice %4 {offsets = [1, 0, 0], sizes = [4, 4, 1024], strides = [1, 1, 1]} : vector<5x5x1024xbf16> to vector<4x4x1024xbf16>
    %17 = vector.shape_cast %16 : vector<4x4x1024xbf16> to vector<16x1024xbf16>
    %c1_15 = arith.constant 1 : index
    %c0_16 = arith.constant 0 : index
    %c0_17 = arith.constant 0 : index
    %c0_18 = arith.constant 0 : index
    %18 = vector.load %arg5[%c1_15, %c0_16, %c0_17, %c0_18] : memref<2x2x1024x128xbf16, #tpu.memory_space<vmem>>, vector<1x1x1024x128xbf16>
    %19 = vector.shape_cast %18 : vector<1x1x1024x128xbf16> to vector<1024x128xbf16>
    %cst_19 = arith.constant dense<0.000000e+00> : vector<16x128xf32>
    %20 = tpu.matmul %17, %19, %cst_19 {dimension_numbers = #tpu.dot_dimension_numbers<[1], [0], [0], [1], [0, 0, 1, 1], [], []>} : vector<16x1024xbf16>, vector<1024x128xbf16>, vector<16x128xf32> -> vector<16x128xf32>
    %21 = arith.addf %15, %20 : vector<16x128xf32>
    %22 = vector.extract_strided_slice %4 {offsets = [1, 1, 0], sizes = [4, 4, 1024], strides = [1, 1, 1]} : vector<5x5x1024xbf16> to vector<4x4x1024xbf16>
    %23 = vector.shape_cast %22 : vector<4x4x1024xbf16> to vector<16x1024xbf16>
    %c1_20 = arith.constant 1 : index
    %c1_21 = arith.constant 1 : index
    %c0_22 = arith.constant 0 : index
    %c0_23 = arith.constant 0 : index
    %24 = vector.load %arg5[%c1_20, %c1_21, %c0_22, %c0_23] : memref<2x2x1024x128xbf16, #tpu.memory_space<vmem>>, vector<1x1x1024x128xbf16>
    %25 = vector.shape_cast %24 : vector<1x1x1024x128xbf16> to vector<1024x128xbf16>
    %cst_24 = arith.constant dense<0.000000e+00> : vector<16x128xf32>
    %26 = tpu.matmul %23, %25, %cst_24 {dimension_numbers = #tpu.dot_dimension_numbers<[1], [0], [0], [1], [0, 0, 1, 1], [], []>} : vector<16x1024xbf16>, vector<1024x128xbf16>, vector<16x128xf32> -> vector<16x128xf32>
    %27 = arith.addf %21, %26 : vector<16x128xf32>
    %c0_25 = arith.constant 0 : index
    %c0_26 = arith.constant 0 : index
    %28 = vector.load %arg6[%c0_25, %c0_26] : memref<1x128xf32, #tpu.memory_space<vmem>>, vector<1x128xf32>
    %29 = vector.broadcast %28 : vector<1x128xf32> to vector<16x128xf32>
    %30 = arith.mulf %27, %29 : vector<16x128xf32>
    %c0_27 = arith.constant 0 : index
    %c0_28 = arith.constant 0 : index
    %31 = vector.load %arg7[%c0_27, %c0_28] : memref<1x128xf32, #tpu.memory_space<vmem>>, vector<1x128xf32>
    %32 = vector.broadcast %31 : vector<1x128xf32> to vector<16x128xf32>
    %33 = arith.addf %30, %32 : vector<16x128xf32>
    %34 = vector.shape_cast %33 : vector<16x128xf32> to vector<4x4x128xf32>
    %cst_29 = arith.constant 0.000000e+00 : f32
    %35 = vector.broadcast %cst_29 : f32 to vector<4x4x128xf32>
    %36 = arith.maximumf %34, %35 : vector<4x4x128xf32>
    %c0_30 = arith.constant 0 : index
    %c0_31 = arith.constant 0 : index
    %c0_32 = arith.constant 0 : index
    %c0_33 = arith.constant 0 : index
    %37 = vector.load %arg8[%c0_30, %c0_31, %c0_32, %c0_33] : memref<1x4x4x128xf32, #tpu.memory_space<vmem>>, vector<1x4x4x128xf32>
    %38 = vector.shape_cast %37 : vector<1x4x4x128xf32> to vector<4x4x128xf32>
    %39 = vector.shape_cast %36 : vector<4x4x128xf32> to vector<1x4x4x128xf32>
    tpu.vector_store %arg8[%c0_30, %c0_31, %c0_32, %c0_33], %39 {strides = array<i32>} : memref<1x4x4x128xf32, #tpu.memory_space<vmem>>, vector<1x4x4x128xf32>,
    return
  }
  func.func @transform_0(%arg0: i32, %arg1: i32, %arg2: i32) -> (i32, i32, i32, i32) {
    %c0_i32 = arith.constant 0 : i32
    %c0_i32_0 = arith.constant 0 : i32
    %c0_i32_1 = arith.constant 0 : i32
    return %arg0, %arg1, %c0_i32, %c0_i32_0 : i32, i32, i32, i32
  }
  func.func @transform_1(%arg0: i32, %arg1: i32, %arg2: i32) -> (i32, i32, i32, i32) {
    %c1_i32 = arith.constant 1 : i32
    %0 = arith.addi %arg1, %c1_i32 : i32
    %c4_i32 = arith.constant 4 : i32
    %1 = arith.muli %0, %c4_i32 : i32
    %c0_i32 = arith.constant 0 : i32
    %c0_i32_0 = arith.constant 0 : i32
    %c0_i32_1 = arith.constant 0 : i32
    return %arg0, %1, %c0_i32, %c0_i32_0 : i32, i32, i32, i32
  }
  func.func @transform_2(%arg0: i32, %arg1: i32, %arg2: i32) -> (i32, i32, i32, i32) {
    %c0_i32 = arith.constant 0 : i32
    %c0_i32_0 = arith.constant 0 : i32
    %c0_i32_1 = arith.constant 0 : i32
    %c0_i32_2 = arith.constant 0 : i32
    return %c0_i32, %c0_i32_0, %c0_i32_1, %arg2 : i32, i32, i32, i32
  }
  func.func @transform_3(%arg0: i32, %arg1: i32, %arg2: i32) -> (i32, i32) {
    %c0_i32 = arith.constant 0 : i32
    %c0_i32_0 = arith.constant 0 : i32
    return %c0_i32, %arg2 : i32, i32
  }
  func.func @transform_4(%arg0: i32, %arg1: i32, %arg2: i32) -> (i32, i32) {
    %c0_i32 = arith.constant 0 : i32
    %c0_i32_0 = arith.constant 0 : i32
    return %c0_i32, %arg2 : i32, i32
  }
  func.func @transform_5(%arg0: i32, %arg1: i32, %arg2: i32) -> (i32, i32, i32, i32) {
    %c0_i32 = arith.constant 0 : i32
    %c0_i32_0 = arith.constant 0 : i32
    return %arg0, %arg1, %c0_i32, %arg2 : i32, i32, i32, i32
  }
}

</mosaic_0001>

<bundles_post_ra>
// kernel: tpu_custom_call.1
= control target key start
LH: loop header
LB: loop body
LE: loop exit
PB: predicated region body
PF: predicated region fallthrough
CT: control target
= control target key end

     0   :  { %10 = vsyncpa [#allocation3], 0  ;;  %s5606_s0 = inlined_call_operand.vmem [shape: bf16[2,5,5,1024], index: 0, kind: input, shape index: {}]   ;;  %s5607_s1 = inlined_call_operand.vmem [shape: bf16[2,5,5,1024], index: 1, kind: input, shape index: {}]   ;;  %s5608_s2 = inlined_call_operand.hbm [shape: bf16[2,2,1024,128], index: 2, kind: input, shape index: {}]   ;;  %s5609_s3 = inlined_call_operand.vmem [shape: f32[1,128], index: 3, kind: input, shape index: {}]   ;;  %s5610_s4 = inlined_call_operand.vmem [shape: f32[1,128], index: 4, kind: input, shape index: {}]   ;;  %s5611_s5 = inlined_call_operand.hbm [shape: f32[2,4,4,128], index: 5, kind: output, shape index: {}]  }
   0x1   :  { %11 = vsyncpa [#allocation4], 0 }
   0x2   :  { %13 = vsyncpa [#allocation4 + $0x1], 0  ;;  %s5111_s18 = smov 0   ;;  %s5113_s19 = smov 0  }
   0x3   :  { %s5115_s20 = smov 0   ;;  %s5117_s21 = smov 0  }
   0x4   :  { %s5119_s22 = smov 0   ;;  %s5121_s23 = smov 0  }
   0x5 LB: > { %s3962_s24 = sadd.s32 4294967295, %s5072_s23   ;;  %s3963_s25 = sadd.s32 4294967294, %s5072_s23   ;;  %s5072_s23 = sphi %s5121_s23, %s19_s23   ;;  %s5068_s22 = sphi %s5119_s22, %s5633_s22   ;;  %s5064_s21 = sphi %s5117_s21, %s5632_s21   ;;  %s5060_s20 = sphi %s5115_s20, %s5631_s20   ;;  %s5056_s19 = sphi %s5113_s19, %s5630_s19   ;;  %s5052_s18 = sphi %s5111_s18, %s5629_s18  }
   0x6   : > { %s38_s26 = sadd.s32 1, %s5068_s22  ;;  %s187_s27 = sadd.s32 1, %s5060_s20 }
   0x7   : > { %p40_p0 = scmp.ge.s32.totalorder %s38_s26, 2  ;;  %p197_p1 = scmp.ne.s32.totalorder %s5060_s20, %s5056_s19 }
   0x8   : > { %p198_p2 = scmp.eq.s32.totalorder %s3962_s24, 1  ;;  %p203_p3 = scmp.ne.s32.totalorder %s5056_s19, %s5052_s18 }
   0x9   : > { %s5635_s26 = smov (%p40_p0, %s38_s26), 0  ;;  %p204_p5 = scmp.eq.s32.totalorder %s3963_s25, 1 }
   0xa   : > { %p5151_p4 = por %p198_p2, %p197_p1  ;;  %s180_s29 = ssub.s32 %s5068_s22, %s5635_s26 }
   0xb   : > { %p3964_p6 = scmp.ge.s32.totalorder %s5072_s23, 1  ;;  %p185_p7 = scmp.eq.s32.totalorder %s180_s29, 0 }
   0xc   : > { %s5616_s28 = scalar_select %p5151_p4, 1, 0 }
   0xd   : > { %p5158_p8 = por %p204_p5, %p203_p3  ;;  %p211_p9 = scmp.lt.s32.totalorder %s5072_s23, 3 }
   0xe   : > { %s5164_s6 = scalar_select %p185_p7, %s5060_s20, %s187_s27  }
   0xf   : > { %s5617_s30 = scalar_select %p5158_p8, 1, 0 }
  0x10   : > { %p5166_p10 = pnand %p3964_p6, %p211_p9  ;;  %p5170_p11 = scmp.eq.s32.totalorder %s3962_s24, 0 }
  0x11   : > { %s5074_s9 = smov [#allocation2]   ;;  %s4962_s14 = scalar_lea.hbm %s5608_s2, 32768 }
  0x12   : > { %s5618_s7 = scalar_select %p5166_p10, 1, 0 }
  0x13   : > { %s5619_s8 = scalar_select %p5170_p11, 1, 0 }
  0x14   : > { %p4636_p12 = pneg %p5166_p10  ;;  %s225_s10 = sshll.u32 %s5074_s9, 4  ;;  %s226_s10 = int_to_ptr.vmem [resolvable:$true] %s225_s10 }
  0x15   : > { %p4963_p0 = scmp.ne.s32.totalorder %s5608_s2, %s4962_s14  ;;  %p4969_p5 = scmp.lt.u32.totalorder %s4962_s14, %s5608_s2 }
  0x16   : > { %p5178_p13 = pnand %p5170_p11, %p4636_p12 }
  0x18   : > { %p4964_p1 = pneg %p5178_p13 }
  0x1a   : > { %p4965_p2 = pnand %p4964_p1, %p4963_p0 }
  0x1c   : > { %p4966_p3 = pneg %p4965_p2 }
  0x1e   : > { %p4971_p6 = pnand %p4969_p5, %p4966_p3 }
  0x20   : > { %4974 = shalt.err (!%p4971_p6)
}
  0x21   : > { %s4975_s25 = scalar_lea.vmem %s226_s10, 32768  ;;  %p4983_p8 = scmp.lt.s32.totalorder %s226_s10, %s226_s10 }
  0x22   : > { %p4976_p7 = scmp.ne.s32.totalorder %s226_s10, %s4975_s25  ;;  %p4984_p4 = scmp.lt.s32.totalorder %s4975_s25, %s4975_s25 }
  0x24   : > { %p4978_p9 = pnand %p4976_p7, %p4964_p1  ;;  %p4985_p11 = por %p4984_p4, %p4983_p8 }
  0x26   : > { %p4979_p12 = pneg %p4978_p9 }
  0x28   : > { %p4986_p10 = pnand %p4985_p11, %p4979_p12 }
  0x2a   : > { %4989 = shalt.err (!%p4986_p10)
}
  0x2b   : > { %s5075_s27 = smov 64   ;;  %s5076_s29 = smov 4  }
  0x2c   : > { %4639 = dma.hbm_to_vmem [thread:$0]  (!%p5178_p13), %s5608_s2, 32768, %s226_s10, [#allocation3], %s5075_s27, %s5075_s27, %s5076_s29  }
  0x2d   : > { %p5621_p0 = scmp.ne.s32.totalorder %s5618_s7, 0 }
  0x2e   : > { %p5622_p2 = scmp.ne.s32.totalorder (!%p5621_p0), %s5619_s8, 0 }
  0x2f   : > { %293 = sbr.rel (%p5621_p0) target bundleno = 570 (0x23a), region = 40 }
  0x36   : > { %5043 = dma.done.wait (%p5622_p2), [#allocation3], 32768  }
  0x37   : > { %5045 = vsyncadd (%p5622_p2), [#allocation3], 4294934528  ;;  %p354_p4 = scmp.lt.s32.totalorder %s5064_s21, 1  ;;  %v4702_v0 = vld [vmem:[#allocation2 + $0x240] sm:$0xff]   ;;  %v4706_v4 = vld [vmem:[#allocation2 + $0x248] sm:$0xff]   ;;  %v937_v58 = vlaneseq  ;;  %s345_s24 = sand.u32 1, %s5056_s19  }
  0x38   : > { %v4703_v1 = vld [vmem:[#allocation2 + $0x2c0] sm:$0xff]   ;;  %4276 = vmatprep.subr.bf16.mxu0 %v4702_v0  ;;  %v4707_v5 = vld [vmem:[#allocation2 + $0x2c8] sm:$0xff]   ;;  %v4710_v8 = vld [vmem:[#allocation2 + $0x250] sm:$0xff]   ;;  %vm682_vm0 = vsmask.f32 1280  ;;  %s3971_s12 = sshll.u32 %s345_s24, 4 }
  0x39   : > { %s5206_s13 = scalar_select %p354_p4, %s5064_s21, 1  ;;  %v4704_v2 = vld [vmem:[#allocation2 + $0x200] sm:$0xff]   ;;  %4298 = vmatprep.subr.bf16.mxu1 %v4703_v1  ;;  %v4708_v6 = vld [vmem:[#allocation2 + $0x208] sm:$0xff]   ;;  %v4711_v9 = vld [vmem:[#allocation2 + $0x2d0] sm:$0xff]   ;;  %vm683_vm1 = vsmask.f32 3336 }
  0x3a   : > { %v4705_v3 = vld [vmem:[#allocation2 + $0x280] sm:$0xff]   ;;  %4277 = vmatpush3.bf16.msra.mxu0 %v4704_v2  ;;  %v4709_v7 = vld [vmem:[#allocation2 + $0x288] sm:$0xff]   ;;  %v4712_v10 = vld [vmem:[#allocation2 + $0x210] sm:$0xff]   ;;  %vm685_vm2 = vsmask.f32 5392  ;;  %p5627_p10 = scmp.ne.s32.totalorder %s5616_s28, 0 }
  0x3b   : > { %4299 = vmatpush3.bf16.msra.mxu1 %v4705_v3  ;;  %4278 = vmatprep.subr.bf16.mxu0 %v4706_v4  ;;  %v4713_v11 = vld [vmem:[#allocation2 + $0x290] sm:$0xff]   ;;  %v4714_v12 = vld [vmem:[#allocation2 + $0x258] sm:$0xff]   ;;  %v4718_v16 = vld [vmem:[#allocation2 + $0x260] sm:$0xff]   ;;  %s4628_s7 = smul.u32 160, %s5206_s13  ;;  %vm687_vm3 = vsmask.f32 7448 }
  0x3c   : > { %4300 = vmatprep.subr.bf16.mxu1 %v4707_v5  ;;  %v4715_v13 = vld [vmem:[#allocation2 + $0x2d8] sm:$0xff]   ;;  %v4719_v17 = vld [vmem:[#allocation2 + $0x2e0] sm:$0xff]   ;;  %v4722_v20 = vld [vmem:[#allocation2 + $0x268] sm:$0xff]   ;;  %v5077_v56 = vmov 1983009808   ;;  %s4275_s13 = sshll.u32 %s5064_s21, 8 }
  0x3d   : > { %v4716_v14 = vld [vmem:[#allocation2 + $0x218] sm:$0xff]   ;;  %v4720_v18 = vld [vmem:[#allocation2 + $0x220] sm:$0xff]   ;;  %v4723_v21 = vld [vmem:[#allocation2 + $0x2e8] sm:$0xff]   ;;  %s5214_s11 = scalar_lea.vmem %s5606_s0, %s4628_s7  ;;  %v935_v57 = vunpack.c.l.s4 %v5077_v56  ;;  %s4274_s14 = sadd.s32 128, %s4628_s7 }
  0x3e   : > { %4279 = vmatpush3.bf16.msra.mxu0 %v4708_v6  ;;  %v4717_v15 = vld [vmem:[#allocation2 + $0x298] sm:$0xff]   ;;  %v4721_v19 = vld [vmem:[#allocation2 + $0x2a0] sm:$0xff]   ;;  %v4724_v22 = vld [vmem:[#allocation2 + $0x228] sm:$0xff]   ;;  %s5429_s17 = scalar_lea.vmem %s5607_s1, %s4274_s14  ;;  %s347_s7 = scalar_lea.vmem [#allocation5], %s3971_s12 }
  0x3f   : > { %4301 = vmatpush3.bf16.msra.mxu1 %v4709_v7  ;;  %4280 = vmatprep.subr.bf16.mxu0 %v4710_v8  ;;  %v4725_v23 = vld [vmem:[#allocation2 + $0x2a8] sm:$0xff]   ;;  %v4726_v24 = vld [vmem:[#allocation2 + $0x270] sm:$0xff]   ;;  %v4730_v28 = vld [vmem:[#allocation2 + $0x278] sm:$0xff]   ;;  %s3817_s8 = sshll.u32 %s347_s7, 4  ;;  %s5556_s14 = scalar_lea.hbm %s5611_s5, %s4275_s13  ;;  %s5558_s8 = int_to_ptr.vmem [resolvable:$true] %s3817_s8 }
  0x40   : > { %4302 = vmatprep.subr.bf16.mxu1 %v4711_v9  ;;  %v4727_v25 = vld [vmem:[#allocation2 + $0x2f0] sm:$0xff]   ;;  %v4731_v29 = vld [vmem:[#allocation2 + $0x2f8] sm:$0xff]   ;;  %v5217_v32 = vld.sshfl [vmem:[%s5214_s11] sm:$0x5f pattern:$0x76325410] }
  0x41   : > { %v4728_v26 = vld [vmem:[#allocation2 + $0x230] sm:$0xff]   ;;  %v4732_v30 = vld [vmem:[#allocation2 + $0x238] sm:$0xff]   ;;  %v5220_v33 = vld.sshfl [vmem:[%s5214_s11 + $0x8] sm:$0x5f pattern:$0x76325410] }
  0x42   : > { %4281 = vmatpush3.bf16.msra.mxu0 %v4712_v10  ;;  %v4729_v27 = vld [vmem:[#allocation2 + $0x2b0] sm:$0xff]   ;;  %v4733_v31 = vld [vmem:[#allocation2 + $0x2b8] sm:$0xff]   ;;  %v5223_v34 = vld.sshfl [vmem:[%s5214_s11 + $0x20] sm:$0x5f pattern:$0x76325410]  ;;  %v440_v35 = vcombine.low %v5217_v32, %v5220_v33  ;;  %v674_v36 = vcombine.high %v5217_v32, %v5220_v33 }
  0x43   : > { %4303 = vmatpush3.bf16.msra.mxu1 %v4713_v11  ;;  %4282 = vmatprep.subr.bf16.mxu0 %v4714_v12  ;;  %v4734_v37 = vld [vmem:[#allocation2 + $0x340] sm:$0xff]   ;;  %v5230_v39 = vld.sshfl [vmem:[%s5214_s11 + $0x28] sm:$0x5f pattern:$0x76325410]  ;;  %vm5244_vm4 = vmor %vm682_vm0, %vm683_vm1  ;;  %v938_v11 = vshrl.u32 %v937_v58, 7 }
  0x44   : > { %4304 = vmatprep.subr.bf16.mxu1 %v4715_v13  ;;  %v4735_v38 = vld [vmem:[#allocation2 + $0x3c0] sm:$0xff]   ;;  %v470_v41 = vcombine.low %v5223_v34, %v5230_v39  ;;  %v690_v42 = vshrl.u32 %v440_v35, 16  ;;  %v693_v43 = vshll.u32 %v440_v35, 16  ;;  %v676_v45 = vcombine.high %v5223_v34, %v5230_v39  ;;  %vm686_vm5 = vmor %vm5244_vm4, %vm685_vm2  ;;  %v4742_v56 = vld [vmem:[#allocation2 + $0x350] sm:$0xff]   ;;  %s5560_s21 = scalar_lea.sflag [#allocation4], %s345_s24  ;;  %s4990_s15 = scalar_lea.vmem %s5558_s8, 256 }
  0x45   : > { %v5233_v40 = vld.sshfl [vmem:[%s5214_s11 + $0x40] sm:$0x5f pattern:$0x76325410]  ;;  %v699_v47 = vshll.u32 %v674_v36, 16  ;;  %vm5266_vm6 = vmor %vm686_vm5, %vm687_vm3  ;;  %p4991_p8 = scmp.ne.s32.totalorder %s5558_s8, %s4990_s15  ;;  %s5078_s16 = smov [#allocation5]  }
  0x46   : > { %4283 = vmatpush3.bf16.msra.mxu0 %v4716_v14  ;;  %v5238_v44 = vld.sshfl [vmem:[%s5214_s11 + $0x48] sm:$0x5f pattern:$0x76325410]  ;;  %v692_v51 = vrot.slane %v690_v42, 6  ;;  %v695_v52 = vrot.slane %v693_v43, 7  ;;  %v4130_v58 = vcombine.low %v5223_v34, %v5233_v40 }
  0x47   : > { %4305 = vmatpush3.bf16.msra.mxu1 %v4717_v15  ;;  %4284 = vmatprep.subr.bf16.mxu0 %v4718_v16  ;;  %v5249_v48 = vld.sshfl [vmem:[%s5214_s11 + $0x60] sm:$0x5f pattern:$0x76325410]  ;;  %v500_v49 = vcombine.low %v5233_v40, %v5238_v44  ;;  %v678_v50 = vcombine.high %v5233_v40, %v5238_v44  ;;  %v701_v54 = vrot.slane %v699_v47, 7  ;;  %v718_v55 = vshrl.u32 %v470_v41, 16  ;;  %p4992_p11 = pnand %p4991_p8, %p5627_p10 }
  0x48   : > { %4306 = vmatprep.subr.bf16.mxu1 %v4719_v17  ;;  %v5256_v53 = vld.sshfl [vmem:[%s5214_s11 + $0x68] sm:$0x5f pattern:$0x76325410]  ;;  %v696_v61 = vor.u32 %v695_v52, %v692_v51  ;;  %v721_v62 = vshll.u32 %v470_v41, 16  ;;  %v727_v0 = vshll.u32 %v676_v45, 16  ;;  %v936_v15 = vunpack.c.0.s8 %v935_v57 }
  0x49   : > { %v530_v59 = vcombine.low %v5249_v48, %v5256_v53  ;;  %v680_v60 = vcombine.high %v5249_v48, %v5256_v53  ;;  %v720_v63 = vrot.slane %v718_v55, 6  ;;  %v746_v1 = vshrl.u32 %v500_v49, 16  ;;  %v4736_v43 = vld [vmem:[#allocation2 + $0x300] sm:$0xff]   ;;  %v4738_v51 = vld [vmem:[#allocation2 + $0x348] sm:$0xff]   ;;  %v4743_v57 = vld [vmem:[#allocation2 + $0x3d0] sm:$0xff]   ;;  %p4993_p13 = pneg %p4992_p11 }
  0x4a   : > { %4285 = vmatpush3.bf16.msra.mxu0 %v4720_v18  ;;  %v749_v2 = vshll.u32 %v500_v49, 16  ;;  %v697_v3 = vrot.slane %v696_v61, 2  ;;  %v723_v4 = vrot.slane %v721_v62, 7  ;;  %v755_v5 = vshll.u32 %v678_v50, 16  ;;  %v4737_v45 = vld [vmem:[#allocation2 + $0x380] sm:$0xff]   ;;  %v4739_v52 = vld [vmem:[#allocation2 + $0x3c8] sm:$0xff]  }
  0x4b   : > { %4307 = vmatpush3.bf16.msra.mxu1 %v4721_v19  ;;  %4286 = vmatprep.subr.bf16.mxu0 %v4722_v20  ;;  %v774_v6 = vshrl.u32 %v530_v59, 16  ;;  %v748_v8 = vrot.slane %v746_v1, 6  ;;  %v777_v10 = vshll.u32 %v530_v59, 16  ;;  %v729_v13 = vrot.slane %v727_v0, 7  ;;  %v4741_v55 = vld [vmem:[#allocation2 + $0x388] sm:$0xff]   ;;  %v4745_v61 = vld [vmem:[#allocation2 + $0x390] sm:$0xff]  }
  0x4c   : > { %4308 = vmatprep.subr.bf16.mxu1 %v4723_v21  ;;  %v751_v9 = vrot.slane %v749_v2, 7  ;;  %v724_v12 = vor.u32 %v723_v4, %v720_v63  ;;  %v757_v17 = vrot.slane %v755_v5, 7  ;;  %v783_v19 = vshll.u32 %v680_v60, 16  ;;  %v4744_v60 = vld [vmem:[#allocation2 + $0x310] sm:$0xff]   ;;  %v4746_v62 = vld [vmem:[#allocation2 + $0x358] sm:$0xff]   ;;  %v4750_v2 = vld [vmem:[#allocation2 + $0x360] sm:$0xff]  }
  0x4d   : > { %v776_v14 = vrot.slane %v774_v6, 6  ;;  %v779_v18 = vrot.slane %v777_v10, 7  ;;  %v702_v20 = vsel %vm5266_vm6, %v697_v3, %v701_v54  ;;  %v4740_v54 = vld [vmem:[#allocation2 + $0x308] sm:$0xff]   ;;  %v4131_v59 = vcombine.low %v5230_v39, %v5238_v44  ;;  %v4747_v63 = vld [vmem:[#allocation2 + $0x3d8] sm:$0xff]   ;;  %v4751_v3 = vld [vmem:[#allocation2 + $0x3e0] sm:$0xff]  }
  0x4e   : > { %4287 = vmatpush3.bf16.msra.mxu0 %v4724_v22  ;;  %v752_v16 = vor.u32 %v751_v9, %v748_v8  ;;  %v725_v21 = vrot.slane %v724_v12, 2  ;;  %v4748_v0 = vld [vmem:[#allocation2 + $0x318] sm:$0xff]   ;;  %v4752_v4 = vld [vmem:[#allocation2 + $0x320] sm:$0xff]   ;;  %v4754_v6 = vld [vmem:[#allocation2 + $0x368] sm:$0xff]  }
  0x4f   : > { %4309 = vmatpush3.bf16.msra.mxu1 %v4725_v23  ;;  %4288 = vmatprep.subr.bf16.mxu0 %v4726_v24  ;;  %v780_v23 = vor.u32 %v779_v18, %v776_v14  ;;  %v785_v24 = vrot.slane %v783_v19, 7  ;;  %v4749_v1 = vld [vmem:[#allocation2 + $0x398] sm:$0xff]   ;;  %v4753_v5 = vld [vmem:[#allocation2 + $0x3a0] sm:$0xff]   ;;  %v4755_v8 = vld [vmem:[#allocation2 + $0x3e8] sm:$0xff]  }
  0x50   : > { %4310 = vmatprep.subr.bf16.mxu1 %v4727_v25  ;;  %v753_v22 = vrot.slane %v752_v16, 2  ;;  %v5274_v25 = vsel %vm5266_vm6, %v725_v21, %v729_v13  ;;  %v5301_v9 = vld.sshfl [vmem:[%s5214_s11 + $0x10] sm:$0x5f pattern:$0x76325410]  ;;  %v4756_v10 = vld [vmem:[#allocation2 + $0x328] sm:$0xff]  }
  0x51   : > { %v5304_v12 = vld.sshfl [vmem:[%s5214_s11 + $0x18] sm:$0x5f pattern:$0x76325410]  ;;  %v4758_v13 = vld [vmem:[#allocation2 + $0x370] sm:$0xff]  }
  0x52   : > { %4289 = vmatpush3.bf16.msra.mxu0 %v4728_v26  ;;  %v5276_v26 = vsub.s32 %v936_v15, %v938_v11  ;;  %v4757_v11 = vld [vmem:[#allocation2 + $0x3a8] sm:$0xff]   ;;  %v4759_v14 = vld [vmem:[#allocation2 + $0x3f0] sm:$0xff]   ;;  %v455_v16 = vcombine.low %v5301_v9, %v5304_v12  ;;  %v5314_v18 = vld.sshfl [vmem:[%s5214_s11 + $0x38] sm:$0x5f pattern:$0x76325410] }
  0x53   : > { %4311 = vmatpush3.bf16.msra.mxu1 %v4729_v27  ;;  %4290 = vmatprep.subr.bf16.mxu0 %v4730_v28  ;;  %v5280_v27 = vsel %vm5266_vm6, %v753_v22, %v757_v17  ;;  %v781_v28 = vrot.slane %v780_v23, 2  ;;  %v5307_v15 = vld.sshfl [vmem:[%s5214_s11 + $0x30] sm:$0x5f pattern:$0x76325410]  ;;  %v675_v17 = vcombine.high %v5301_v9, %v5304_v12 }
  0x54   : > { %4312 = vmatprep.subr.bf16.mxu1 %v4731_v29  ;;  %v930_v29 = vcombine.low %v702_v20, %v5274_v25  ;;  %v5317_v19 = vld.sshfl [vmem:[%s5214_s11 + $0x50] sm:$0x5f pattern:$0x76325410]  ;;  %v704_v21 = vshrl.u32 %v455_v16, 16  ;;  %v707_v22 = vshll.u32 %v455_v16, 16 }
  0x55   : > { %v4760_v23 = vld [vmem:[#allocation2 + $0x330] sm:$0xff]  }
  0x56   : > { %4291 = vmatpush3.bf16.msra.mxu0 %v4732_v30  ;;  %v931_v30 = vcombine.high %v702_v20, %v5274_v25  ;;  %v940_v36 = vrot.slane %v930_v29, %v5276_v26  ;;  %v485_v20 = vcombine.low %v5307_v15, %v5314_v18  ;;  %v677_v29 = vcombine.high %v5307_v15, %v5314_v18 }
  0x57   : > { %4313 = vmatpush3.bf16.msra.mxu1 %v4733_v31  ;;  %4320 = vmatprep.subr.bf16.mxu0 %v4734_v37  ;;  %v5286_v31 = vsel %vm5266_vm6, %v781_v28, %v785_v24  ;;  %v4761_v24 = vld [vmem:[#allocation2 + $0x3b0] sm:$0xff]   ;;  %v5322_v28 = vld.sshfl [vmem:[%s5214_s11 + $0x58] sm:$0x5f pattern:$0x76325410] }
  0x58   : > { %4342 = vmatprep.subr.bf16.mxu1 %v4735_v38  ;;  %v932_v35 = vcombine.low %v5280_v27, %v5286_v31  ;;  %v933_v37 = vcombine.high %v5280_v27, %v5286_v31  ;;  %v947_v38 = vrot.slane %v931_v30, %v5276_v26  ;;  %v713_v30 = vshll.u32 %v675_v17, 16 }
  0x5a   : > { %v954_v41 = vrot.slane %v932_v35, %v5276_v26  ;;  %v961_v42 = vrot.slane %v933_v37, %v5276_v26  ;;  %v4762_v35 = vld [vmem:[#allocation2 + $0x378] sm:$0xff]   ;;  %v515_v37 = vcombine.low %v5317_v19, %v5322_v28 }
  0x5c   : > { %v963_v46 = vcombine.high %v940_v36, %v954_v41  ;;  %v965_v47 = vcombine.high %v947_v38, %v961_v42  ;;  %v962_v49 = vcombine.low %v940_v36, %v954_v41  ;;  %v964_v50 = vcombine.low %v947_v38, %v961_v42  ;;  %v5327_v36 = vld.sshfl [vmem:[%s5214_s11 + $0x70] sm:$0x5f pattern:$0x76325410] }
  0x5d   : > { %v679_v38 = vcombine.high %v5317_v19, %v5322_v28  ;;  %v706_v41 = vrot.slane %v704_v21, 6  ;;  %v709_v42 = vrot.slane %v707_v22, 7 }
  0x5e   : > { %1426 = vmatprep.mubr.bf16.mxu0 %v963_v46  ;;  %1467 = vmatprep.mubr.bf16.mxu1 %v965_v47  ;;  %v732_v46 = vshrl.u32 %v485_v20, 16  ;;  %v4763_v47 = vld [vmem:[#allocation2 + $0x3f8] sm:$0xff]  }
  0x5f   : > { %1427 = vmatmul.mubr.bf16.vlgmr.msra.gmra.mrb[0].mxu0 %v962_v49  ;;  %1468 = vmatmul.mubr.bf16.vlgmr.msra.gmra.mrb[0].mxu1 %v964_v50 }
  0x60   : > { %4321 = vmatpush3.bf16.msra.mxu0 %v4736_v43  ;;  %4343 = vmatpush3.bf16.msra.mxu1 %v4737_v45  ;;  %v5334_v43 = vld.sshfl [vmem:[%s5214_s11 + $0x78] sm:$0x5f pattern:$0x76325410]  ;;  %v715_v45 = vrot.slane %v713_v30, 7  ;;  %v4054_v30 = vcombine.low %v5217_v32, %v5223_v34 }
  0x61   : > { %4322 = vmatprep.subr.bf16.mxu0 %v4738_v51  ;;  %4344 = vmatprep.subr.bf16.mxu1 %v4739_v52  ;;  %v545_v49 = vcombine.low %v5327_v36, %v5334_v43  ;;  %v681_v50 = vcombine.high %v5327_v36, %v5334_v43  ;;  %v710_v51 = vor.u32 %v709_v42, %v706_v41  ;;  %v735_v52 = vshll.u32 %v485_v20, 16 }
  0x63   : > { %v797_v17 = vshll.u32 %v681_v50, 16 }
  0x64   : > { %4323 = vmatpush3.bf16.msra.mxu0 %v4740_v54  ;;  %4345 = vmatpush3.bf16.msra.mxu1 %v4741_v55  ;;  %v4764_v54 = vld [vmem:[#allocation2 + $0x338] sm:$0xff]  }
  0x65   : > { %4324 = vmatprep.subr.bf16.mxu0 %v4742_v56  ;;  %4346 = vmatprep.subr.bf16.mxu1 %v4743_v57  ;;  %v4765_v55 = vld [vmem:[#allocation2 + $0x3b8] sm:$0xff]   ;;  %v734_v56 = vrot.slane %v732_v46, 6  ;;  %v741_v57 = vshll.u32 %v677_v29, 16  ;;  %v4057_v46 = vcombine.low %v5238_v44, %v5256_v53  ;;  %v4135_v53 = vcombine.low %v5314_v18, %v5322_v28 }
  0x66   : > { %v4859_v44 = vld [vmem:[#allocation2 + $0x4f8] sm:$0xff]  }
  0x68   : > { %4325 = vmatpush3.bf16.msra.mxu0 %v4744_v60  ;;  %4347 = vmatpush3.bf16.msra.mxu1 %v4745_v61  ;;  %v760_v60 = vshrl.u32 %v515_v37, 16  ;;  %v763_v61 = vshll.u32 %v515_v37, 16 }
  0x69   : > { %4326 = vmatprep.subr.bf16.mxu0 %v4746_v62  ;;  %4348 = vmatprep.subr.bf16.mxu1 %v4747_v63  ;;  %v711_v62 = vrot.slane %v710_v51, 2  ;;  %v737_v63 = vrot.slane %v735_v52, 7  ;;  %v5375_v51 = vrot.slane %v4054_v30, %v5276_v26  ;;  %v4785_v30 = vld [vmem:[#allocation2 + $0xa0] sm:$0xff]  }
  0x6b   : > { %v716_v20 = vsel %vm5266_vm6, %v711_v62, %v715_v45  ;;  %v4056_v45 = vcombine.low %v5233_v40, %v5249_v48  ;;  %v4134_v48 = vcombine.low %v5307_v15, %v5317_v19  ;;  %v4855_v40 = vld [vmem:[#allocation2 + $0x4f0] sm:$0xff]  }
  0x6c   : > { %4327 = vmatpush3.bf16.msra.mxu0 %v4748_v0  ;;  %4349 = vmatpush3.bf16.msra.mxu1 %v4749_v1  ;;  %v769_v0 = vshll.u32 %v679_v38, 16  ;;  %v788_v1 = vshrl.u32 %v545_v49, 16 }
  0x6d   : > { %4328 = vmatprep.subr.bf16.mxu0 %v4750_v2  ;;  %4350 = vmatprep.subr.bf16.mxu1 %v4751_v3  ;;  %v762_v2 = vrot.slane %v760_v60, 6  ;;  %v765_v3 = vrot.slane %v763_v61, 7  ;;  %v5386_v60 = vrot.slane %v4057_v46, %v5276_v26  ;;  %v4769_v61 = vld [vmem:[#allocation2 + $0x80] sm:$0xff]   ;;  %v4791_v46 = vld [vmem:[#allocation2 + $0xf0] sm:$0xff]  }
  0x70   : > { %4329 = vmatpush3.bf16.msra.mxu0 %v4752_v4  ;;  %4351 = vmatpush3.bf16.msra.mxu1 %v4753_v5  ;;  %v791_v4 = vshll.u32 %v545_v49, 16  ;;  %v4766_v5 = vld [vmem:[#allocation2 + $0x40] sm:$0xff]  }
  0x71   : > { %4330 = vmatprep.subr.bf16.mxu0 %v4754_v6  ;;  %4352 = vmatprep.subr.bf16.mxu1 %v4755_v8  ;;  %v738_v6 = vor.u32 %v737_v63, %v734_v56  ;;  %v743_v8 = vrot.slane %v741_v57, 7  ;;  %v4768_v56 = vld [vmem:[#allocation2] sm:$0xff]   ;;  %v5383_v57 = vrot.slane %v4056_v45, %v5276_v26  ;;  %v4790_v45 = vld [vmem:[#allocation2 + $0x70] sm:$0xff]  }
  0x72   : > { %v793_v16 = vrot.slane %v791_v4, 7  ;;  %v4772_v4 = vld [vmem:[#allocation2 + $0x8] sm:$0xff]  }
  0x73   : > { %v739_v21 = vrot.slane %v738_v6, 2 }
  0x74   : > { %4331 = vmatpush3.bf16.msra.mxu0 %v4756_v10  ;;  %4353 = vmatpush3.bf16.msra.mxu1 %v4757_v11  ;;  %v771_v10 = vrot.slane %v769_v0, 7  ;;  %v790_v11 = vrot.slane %v788_v1, 6 }
  0x75   : > { %4332 = vmatprep.subr.bf16.mxu0 %v4758_v13  ;;  %4354 = vmatprep.subr.bf16.mxu1 %v4759_v14  ;;  %v4767_v13 = vld [vmem:[#allocation2 + $0xc0] sm:$0xff]   ;;  %v766_v14 = vor.u32 %v765_v3, %v762_v2  ;;  %v5344_v29 = vsel %vm5266_vm6, %v739_v21, %v743_v8  ;;  %v4770_v2 = vld [vmem:[#allocation2 + $0x48] sm:$0xff]   ;;  %v4781_v21 = vld [vmem:[#allocation2 + $0x98] sm:$0xff]  }
  0x76   : > { %v966_v41 = vcombine.low %v716_v20, %v5344_v29  ;;  %v967_v42 = vcombine.high %v716_v20, %v5344_v29  ;;  %v4771_v3 = vld [vmem:[#allocation2 + $0xc8] sm:$0xff]   ;;  %v4780_v20 = vld [vmem:[#allocation2 + $0x18] sm:$0xff]  }
  0x77   : > { %v767_v22 = vrot.slane %v766_v14, 2  ;;  %v4773_v8 = vld [vmem:[#allocation2 + $0x88] sm:$0xff]   ;;  %v4777_v14 = vld [vmem:[#allocation2 + $0x90] sm:$0xff]  }
  0x78   : > { %4333 = vmatpush3.bf16.msra.mxu0 %v4760_v23  ;;  %4355 = vmatpush3.bf16.msra.mxu1 %v4761_v24  ;;  %v794_v23 = vor.u32 %v793_v16, %v790_v11  ;;  %v799_v24 = vrot.slane %v797_v17, 7  ;;  %v4775_v11 = vld [vmem:[#allocation2 + $0xd0] sm:$0xff]   ;;  %v4778_v16 = vld [vmem:[#allocation2 + $0x58] sm:$0xff]  }
  0x79   : > { %4334 = vmatprep.subr.bf16.mxu0 %v4762_v35  ;;  %4356 = vmatprep.subr.bf16.mxu1 %v4763_v47  ;;  %v4055_v35 = vcombine.low %v5220_v33, %v5230_v39  ;;  %v5352_v37 = vsel %vm5266_vm6, %v767_v22, %v771_v10  ;;  %v976_v33 = vrot.slane %v966_v41, %v5276_v26  ;;  %v4774_v10 = vld [vmem:[#allocation2 + $0x50] sm:$0xff]   ;;  %v4779_v17 = vld [vmem:[#allocation2 + $0xd8] sm:$0xff]   ;;  %v4782_v22 = vld [vmem:[#allocation2 + $0x60] sm:$0xff]  }
  0x7a   : > { %v795_v38 = vrot.slane %v794_v23, 2  ;;  %v983_v47 = vrot.slane %v967_v42, %v5276_v26  ;;  %v4783_v23 = vld [vmem:[#allocation2 + $0xe0] sm:$0xff]   ;;  %v4788_v41 = vld [vmem:[#allocation2 + $0x28] sm:$0xff]   ;;  %v4858_v39 = vld [vmem:[#allocation2 + $0x478] sm:$0xff]  }
  0x7b   : > { %v5378_v52 = vrot.slane %v4055_v35, %v5276_v26  ;;  %v4786_v35 = vld [vmem:[#allocation2 + $0x68] sm:$0xff]  }
  0x7c   : > { %4335 = vmatpush3.bf16.msra.mxu0 %v4764_v54  ;;  %4357 = vmatpush3.bf16.msra.mxu1 %v4765_v55  ;;  %v5362_v32 = vsel %vm5266_vm6, %v795_v38, %v799_v24  ;;  %v4784_v24 = vld [vmem:[#allocation2 + $0x20] sm:$0xff]   ;;  %v4787_v38 = vld [vmem:[#allocation2 + $0xe8] sm:$0xff]  }
  0x7d   : > { %4364 = vmatprep.subr.bf16.mxu0 %v4766_v5  ;;  %4386 = vmatprep.subr.bf16.mxu1 %v4767_v13  ;;  %v968_v49 = vcombine.low %v5352_v37, %v5362_v32  ;;  %v969_v50 = vcombine.high %v5352_v37, %v5362_v32  ;;  %v1591_v5 = vcombine.high %v5375_v51, %v5383_v57  ;;  %v4776_v13 = vld [vmem:[#allocation2 + $0x10] sm:$0xff]   ;;  %v4789_v42 = vld [vmem:[#allocation2 + $0xa8] sm:$0xff]  }
  0x7e   : > { %v1593_v6 = vcombine.high %v5378_v52, %v5386_v60 }
  0x7f   : > { %v990_v54 = vrot.slane %v968_v49, %v5276_v26  ;;  %v997_v55 = vrot.slane %v969_v50, %v5276_v26  ;;  %v4794_v49 = vld [vmem:[#allocation2 + $0x78] sm:$0xff]  }
  0x80   : > { %v4795_v50 = vld [vmem:[#allocation2 + $0xf8] sm:$0xff]  }
  0x81   : > { %v999_v62 = vcombine.high %v976_v33, %v990_v54  ;;  %v1001_v63 = vcombine.high %v983_v47, %v997_v55  ;;  %v998_v0 = vcombine.low %v976_v33, %v990_v54  ;;  %v1000_v1 = vcombine.low %v983_v47, %v997_v55  ;;  %v4792_v33 = vld [vmem:[#allocation2 + $0x30] sm:$0xff]   ;;  %v4796_v54 = vld [vmem:[#allocation2 + $0x38] sm:$0xff]  }
  0x82   : > { %v4793_v47 = vld [vmem:[#allocation2 + $0xb0] sm:$0xff]   ;;  %v4058_v55 = vcombine.low %v5301_v9, %v5307_v15 }
  0x83   : > { %1508 = vmatprep.mubr.bf16.mxu0 %v999_v62  ;;  %1549 = vmatprep.mubr.bf16.mxu1 %v1001_v63  ;;  %v4061_v62 = vcombine.low %v5322_v28, %v5334_v43  ;;  %v4797_v63 = vld [vmem:[#allocation2 + $0xb8] sm:$0xff]   ;;  %v1590_v43 = vcombine.low %v5375_v51, %v5383_v57  ;;  %v4805_v51 = vld [vmem:[#allocation2 + $0x188] sm:$0xff]   ;;  %v4807_v57 = vld [vmem:[#allocation2 + $0x1d0] sm:$0xff]  }
  0x84   : > { %1509 = vmatmul.mubr.bf16.vlgmr.msra.gmra.mrb[4].mxu0 %v998_v0  ;;  %1550 = vmatmul.mubr.bf16.vlgmr.msra.gmra.mrb[4].mxu1 %v1000_v1  ;;  %v4798_v0 = vld [vmem:[#allocation2 + $0x140] sm:$0xff]   ;;  %v4890_v28 = vld [vmem:[#allocation2 + $0x578] sm:$0xff]  }
  0x85   : > { %4365 = vmatpush3.bf16.msra.mxu0 %v4768_v56  ;;  %4387 = vmatpush3.bf16.msra.mxu1 %v4769_v61  ;;  %v4060_v56 = vcombine.low %v5317_v19, %v5327_v36  ;;  %v4059_v61 = vcombine.low %v5304_v12, %v5314_v18  ;;  %v4799_v1 = vld [vmem:[#allocation2 + $0x1c0] sm:$0xff]   ;;  %v5410_v12 = vrot.slane %v4061_v62, %v5276_v26  ;;  %v4888_v19 = vld [vmem:[#allocation2 + $0x530] sm:$0xff]  }
  0x86   : > { %4366 = vmatprep.subr.bf16.mxu0 %v4770_v2  ;;  %4388 = vmatprep.subr.bf16.mxu1 %v4771_v3  ;;  %v4800_v2 = vld [vmem:[#allocation2 + $0x100] sm:$0xff]   ;;  %v5401_v3 = vrot.slane %v4058_v55, %v5276_v26  ;;  %v4829_v55 = vld [vmem:[#allocation2 + $0x1b8] sm:$0xff]  }
  0x87   : > { %2054 = vmatprep.mubr.bf16.mxu0 %v1591_v5  ;;  %2095 = vmatprep.mubr.bf16.mxu1 %v1593_v6  ;;  %v5404_v9 = vrot.slane %v4060_v56, %v5276_v26  ;;  %v5407_v36 = vrot.slane %v4059_v61, %v5276_v26  ;;  %v4801_v5 = vld [vmem:[#allocation2 + $0x180] sm:$0xff]   ;;  %v4802_v6 = vld [vmem:[#allocation2 + $0x148] sm:$0xff]  }
  0x88   : > { %v4830_v56 = vld [vmem:[#allocation2 + $0x440] sm:$0xff]  }
  0x89   : > { %4367 = vmatpush3.bf16.msra.mxu0 %v4772_v4  ;;  %4389 = vmatpush3.bf16.msra.mxu1 %v4773_v8  ;;  %v1592_v4 = vcombine.low %v5378_v52, %v5386_v60  ;;  %v4803_v8 = vld [vmem:[#allocation2 + $0x1c8] sm:$0xff]   ;;  %v4806_v52 = vld [vmem:[#allocation2 + $0x150] sm:$0xff]   ;;  %v4831_v61 = vld [vmem:[#allocation2 + $0x4c0] sm:$0xff]  }
  0x8a   : > { %4368 = vmatprep.subr.bf16.mxu0 %v4774_v10  ;;  %4390 = vmatprep.subr.bf16.mxu1 %v4775_v11  ;;  %v4804_v10 = vld [vmem:[#allocation2 + $0x108] sm:$0xff]   ;;  %v1627_v11 = vcombine.high %v5401_v3, %v5404_v9  ;;  %v4808_v60 = vld [vmem:[#allocation2 + $0x110] sm:$0xff]   ;;  %v4832_v62 = vld [vmem:[#allocation2 + $0x400] sm:$0xff]  }
  0x8d   : > { %4369 = vmatpush3.bf16.msra.mxu0 %v4776_v13  ;;  %4391 = vmatpush3.bf16.msra.mxu1 %v4777_v14  ;;  %v1629_v13 = vcombine.high %v5407_v36, %v5410_v12  ;;  %v4809_v14 = vld [vmem:[#allocation2 + $0x190] sm:$0xff]  }
  0x8e   : > { %4370 = vmatprep.subr.bf16.mxu0 %v4778_v16  ;;  %4392 = vmatprep.subr.bf16.mxu1 %v4779_v17  ;;  %v4810_v16 = vld [vmem:[#allocation2 + $0x158] sm:$0xff]  }
  0x8f   : > { %v4811_v17 = vld [vmem:[#allocation2 + $0x1d8] sm:$0xff]  }
  0x91   : > { %4371 = vmatpush3.bf16.msra.mxu0 %v4780_v20  ;;  %4393 = vmatpush3.bf16.msra.mxu1 %v4781_v21  ;;  %v4812_v20 = vld [vmem:[#allocation2 + $0x118] sm:$0xff]  }
  0x92   : > { %4372 = vmatprep.subr.bf16.mxu0 %v4782_v22  ;;  %4394 = vmatprep.subr.bf16.mxu1 %v4783_v23  ;;  %v4813_v21 = vld [vmem:[#allocation2 + $0x198] sm:$0xff]   ;;  %v4814_v22 = vld [vmem:[#allocation2 + $0x160] sm:$0xff]  }
  0x93   : > { %v4815_v23 = vld [vmem:[#allocation2 + $0x1e0] sm:$0xff]  }
  0x95   : > { %4373 = vmatpush3.bf16.msra.mxu0 %v4784_v24  ;;  %4395 = vmatpush3.bf16.msra.mxu1 %v4785_v30  ;;  %v4816_v24 = vld [vmem:[#allocation2 + $0x120] sm:$0xff]  }
  0x96   : > { %4374 = vmatprep.subr.bf16.mxu0 %v4786_v35  ;;  %4396 = vmatprep.subr.bf16.mxu1 %v4787_v38  ;;  %v4817_v30 = vld [vmem:[#allocation2 + $0x1a0] sm:$0xff]   ;;  %v4818_v35 = vld [vmem:[#allocation2 + $0x168] sm:$0xff]  }
  0x97   : > { %v4819_v38 = vld [vmem:[#allocation2 + $0x1e8] sm:$0xff]  }
  0x99   : > { %4375 = vmatpush3.bf16.msra.mxu0 %v4788_v41  ;;  %4397 = vmatpush3.bf16.msra.mxu1 %v4789_v42  ;;  %v4820_v41 = vld [vmem:[#allocation2 + $0x128] sm:$0xff]  }
  0x9a   : > { %4376 = vmatprep.subr.bf16.mxu0 %v4790_v45  ;;  %4398 = vmatprep.subr.bf16.mxu1 %v4791_v46  ;;  %v4821_v42 = vld [vmem:[#allocation2 + $0x1a8] sm:$0xff]   ;;  %v4822_v45 = vld [vmem:[#allocation2 + $0x170] sm:$0xff]  }
  0x9b   : > { %v4823_v46 = vld [vmem:[#allocation2 + $0x1f0] sm:$0xff]  }
  0x9d   : > { %4377 = vmatpush3.bf16.msra.mxu0 %v4792_v33  ;;  %4399 = vmatpush3.bf16.msra.mxu1 %v4793_v47  ;;  %v4824_v33 = vld [vmem:[#allocation2 + $0x130] sm:$0xff]  }
  0x9e   : > { %4378 = vmatprep.subr.bf16.mxu0 %v4794_v49  ;;  %4400 = vmatprep.subr.bf16.mxu1 %v4795_v50  ;;  %v4825_v47 = vld [vmem:[#allocation2 + $0x1b0] sm:$0xff]   ;;  %v4826_v49 = vld [vmem:[#allocation2 + $0x178] sm:$0xff]  }
  0x9f   : > { %v4827_v50 = vld [vmem:[#allocation2 + $0x1f8] sm:$0xff]  }
  0xa1   : > { %4379 = vmatpush3.bf16.msra.mxu0 %v4796_v54  ;;  %4401 = vmatpush3.bf16.msra.mxu1 %v4797_v63  ;;  %v4828_v54 = vld [vmem:[#allocation2 + $0x138] sm:$0xff]   ;;  %v1626_v63 = vcombine.low %v5401_v3, %v5404_v9  ;;  %v4839_v3 = vld [vmem:[#allocation2 + $0x4d0] sm:$0xff]  }
  0xa2   : > { %4408 = vmatprep.subr.bf16.mxu0 %v4798_v0  ;;  %4430 = vmatprep.subr.bf16.mxu1 %v4799_v1  ;;  %v1628_v0 = vcombine.low %v5407_v36, %v5410_v12  ;;  %v4833_v1 = vld [vmem:[#allocation2 + $0x480] sm:$0xff]   ;;  %v4840_v9 = vld [vmem:[#allocation2 + $0x410] sm:$0xff]   ;;  %v4842_v12 = vld [vmem:[#allocation2 + $0x458] sm:$0xff]  }
  0xa3   : > { %v4841_v36 = vld [vmem:[#allocation2 + $0x490] sm:$0xff]  }
  0xa4   : > { %2055 = vmatmul.mubr.bf16.vlgmr.msra.gmra.mrb[8].mxu0 %v1590_v43  ;;  %2096 = vmatmul.mubr.bf16.vlgmr.msra.gmra.mrb[8].mxu1 %v1592_v4  ;;  %v4835_v43 = vld [vmem:[#allocation2 + $0x4c8] sm:$0xff]  }
  0xa5   : > { %4409 = vmatpush3.bf16.msra.mxu0 %v4800_v2  ;;  %4431 = vmatpush3.bf16.msra.mxu1 %v4801_v5  ;;  %v4834_v2 = vld [vmem:[#allocation2 + $0x448] sm:$0xff]  }
  0xa6   : > { %4410 = vmatprep.subr.bf16.mxu0 %v4802_v6  ;;  %4432 = vmatprep.subr.bf16.mxu1 %v4803_v8  ;;  %v4836_v4 = vld [vmem:[#allocation2 + $0x408] sm:$0xff]   ;;  %v4838_v6 = vld [vmem:[#allocation2 + $0x450] sm:$0xff]   ;;  %v4843_v8 = vld [vmem:[#allocation2 + $0x4d8] sm:$0xff]  }
  0xa7   : > { %2136 = vmatprep.mubr.bf16.mxu0 %v1627_v11  ;;  %2177 = vmatprep.mubr.bf16.mxu1 %v1629_v13  ;;  %v4837_v5 = vld [vmem:[#allocation2 + $0x488] sm:$0xff]   ;;  %v4845_v11 = vld [vmem:[#allocation2 + $0x498] sm:$0xff]   ;;  %v4846_v13 = vld [vmem:[#allocation2 + $0x460] sm:$0xff]  }
  0xa9   : > { %4411 = vmatpush3.bf16.msra.mxu0 %v4804_v10  ;;  %4433 = vmatpush3.bf16.msra.mxu1 %v4805_v51  ;;  %v4844_v10 = vld [vmem:[#allocation2 + $0x418] sm:$0xff]   ;;  %v4847_v51 = vld [vmem:[#allocation2 + $0x4e0] sm:$0xff]  }
  0xaa   : > { %4412 = vmatprep.subr.bf16.mxu0 %v4806_v52  ;;  %4434 = vmatprep.subr.bf16.mxu1 %v4807_v57  ;;  %v4848_v52 = vld [vmem:[#allocation2 + $0x420] sm:$0xff]  }
  0xab   : > { %v4849_v57 = vld [vmem:[#allocation2 + $0x4a0] sm:$0xff]  }
  0xad   : > { %4413 = vmatpush3.bf16.msra.mxu0 %v4808_v60  ;;  %4435 = vmatpush3.bf16.msra.mxu1 %v4809_v14  ;;  %v4850_v60 = vld [vmem:[#allocation2 + $0x468] sm:$0xff]  }
  0xae   : > { %4414 = vmatprep.subr.bf16.mxu0 %v4810_v16  ;;  %4436 = vmatprep.subr.bf16.mxu1 %v4811_v17  ;;  %v4851_v14 = vld [vmem:[#allocation2 + $0x4e8] sm:$0xff]   ;;  %v5432_v16 = vld.sshfl [vmem:[%s5429_s17] sm:$0x5f pattern:$0x76325410] }
  0xaf   : > { %v4958_v17 = vld.sshfl [vmem:[%s5214_s11 + $0x60] sm:$0x5f pattern:$0x76325410] }
  0xb1   : > { %4415 = vmatpush3.bf16.msra.mxu0 %v4812_v20  ;;  %4437 = vmatpush3.bf16.msra.mxu1 %v4813_v21  ;;  %v4132_v20 = vcombine.low %v4958_v17, %v5432_v16  ;;  %v2359_v21 = vrot.slane %v4130_v58, %v5276_v26  ;;  %v4881_v17 = vld [vmem:[#allocation2 + $0x5a0] sm:$0xff]  }
  0xb2   : > { %4416 = vmatprep.subr.bf16.mxu0 %v4814_v22  ;;  %4438 = vmatprep.subr.bf16.mxu1 %v4815_v23  ;;  %v5441_v22 = vld.sshfl [vmem:[%s5429_s17 + $0x8] sm:$0x5f pattern:$0x76325410] }
  0xb3   : > { %v4959_v23 = vld.sshfl [vmem:[%s5214_s11 + $0x68] sm:$0x5f pattern:$0x76325410] }
  0xb5   : > { %4417 = vmatpush3.bf16.msra.mxu0 %v4816_v24  ;;  %4439 = vmatpush3.bf16.msra.mxu1 %v4817_v30  ;;  %v4133_v24 = vcombine.low %v4959_v23, %v5441_v22  ;;  %v2366_v30 = vrot.slane %v4131_v59, %v5276_v26  ;;  %v4860_v59 = vld [vmem:[#allocation2 + $0x438] sm:$0xff]  }
  0xb6   : > { %4418 = vmatprep.subr.bf16.mxu0 %v4818_v35  ;;  %4440 = vmatprep.subr.bf16.mxu1 %v4819_v38  ;;  %v4852_v35 = vld [vmem:[#allocation2 + $0x428] sm:$0xff]   ;;  %v2373_v38 = vrot.slane %v4132_v20, %v5276_v26 }
  0xb7   : > { %v2380_v34 = vrot.slane %v4133_v24, %v5276_v26  ;;  %v4882_v20 = vld [vmem:[#allocation2 + $0x568] sm:$0xff]  }
  0xb8   : > { %v2382_v58 = vcombine.high %v2359_v21, %v2373_v38  ;;  %v4884_v24 = vld [vmem:[#allocation2 + $0x528] sm:$0xff]  }
  0xb9   : > { %4419 = vmatpush3.bf16.msra.mxu0 %v4820_v41  ;;  %4441 = vmatpush3.bf16.msra.mxu1 %v4821_v42  ;;  %v4853_v41 = vld [vmem:[#allocation2 + $0x4a8] sm:$0xff]   ;;  %v4854_v42 = vld [vmem:[#allocation2 + $0x470] sm:$0xff]  }
  0xba   : > { %4420 = vmatprep.subr.bf16.mxu0 %v4822_v45  ;;  %4442 = vmatprep.subr.bf16.mxu1 %v4823_v46  ;;  %v2381_v45 = vcombine.low %v2359_v21, %v2373_v38  ;;  %v4856_v46 = vld [vmem:[#allocation2 + $0x430] sm:$0xff]  }
  0xbb   : > { %v4886_v38 = vld [vmem:[#allocation2 + $0x570] sm:$0xff]  }
  0xbd   : > { %4421 = vmatpush3.bf16.msra.mxu0 %v4824_v33  ;;  %4443 = vmatpush3.bf16.msra.mxu1 %v4825_v47  ;;  %v4857_v33 = vld [vmem:[#allocation2 + $0x4b0] sm:$0xff]   ;;  %v2384_v47 = vcombine.high %v2366_v30, %v2380_v34 }
  0xbe   : > { %4422 = vmatprep.subr.bf16.mxu0 %v4826_v49  ;;  %4444 = vmatprep.subr.bf16.mxu1 %v4827_v50  ;;  %v2383_v49 = vcombine.low %v2366_v30, %v2380_v34  ;;  %v4861_v50 = vld [vmem:[#allocation2 + $0x4b8] sm:$0xff]   ;;  %v4128_v30 = vld.sshfl [vmem:[%s5429_s17 + $0x10] sm:$0x5f pattern:$0x76325410]  ;;  %v5461_v34 = vrot.slane %v4134_v48, %v5276_v26 }
  0xbf   : > { %v4889_v48 = vld [vmem:[#allocation2 + $0x5b0] sm:$0xff]  }
  0xc1   : > { %4423 = vmatpush3.bf16.msra.mxu0 %v4828_v54  ;;  %4445 = vmatpush3.bf16.msra.mxu1 %v4829_v55  ;;  %v4862_v54 = vld [vmem:[#allocation2 + $0x540] sm:$0xff]  }
  0xc2   : > { %4452 = vmatprep.subr.bf16.mxu0 %v4830_v56  ;;  %4474 = vmatprep.subr.bf16.mxu1 %v4831_v61  ;;  %v4863_v55 = vld [vmem:[#allocation2 + $0x5c0] sm:$0xff]  }
  0xc3   : > { %v4864_v56 = vld [vmem:[#allocation2 + $0x500] sm:$0xff]  }
  0xc4   : > { %2137 = vmatmul.mubr.bf16.vlgmr.msra.gmra.mrb[12].mxu0 %v1626_v63  ;;  %2178 = vmatmul.mubr.bf16.vlgmr.msra.gmra.mrb[12].mxu1 %v1628_v0  ;;  %v4865_v61 = vld [vmem:[#allocation2 + $0x580] sm:$0xff]   ;;  %v4866_v63 = vld [vmem:[#allocation2 + $0x548] sm:$0xff]  }
  0xc5   : > { %4453 = vmatpush3.bf16.msra.mxu0 %v4832_v62  ;;  %4475 = vmatpush3.bf16.msra.mxu1 %v4833_v1  ;;  %v2204_v62 = vcombine.low %v5432_v16, %v5441_v22  ;;  %v4867_v0 = vld [vmem:[#allocation2 + $0x5c8] sm:$0xff]  }
  0xc6   : > { %4454 = vmatprep.subr.bf16.mxu0 %v4834_v2  ;;  %4476 = vmatprep.subr.bf16.mxu1 %v4835_v43  ;;  %v4868_v1 = vld [vmem:[#allocation2 + $0x508] sm:$0xff]  }
  0xc7   : > { %2845 = vmatprep.mubr.bf16.mxu0 %v2382_v58  ;;  %2886 = vmatprep.mubr.bf16.mxu1 %v2384_v47  ;;  %v4869_v2 = vld [vmem:[#allocation2 + $0x588] sm:$0xff]   ;;  %v2982_v43 = vshrl.u32 %v2204_v62, 16  ;;  %v5468_v58 = vrot.slane %v4135_v53, %v5276_v26 }
  0xc9   : > { %4455 = vmatpush3.bf16.msra.mxu0 %v4836_v4  ;;  %4477 = vmatpush3.bf16.msra.mxu1 %v4837_v5  ;;  %v4870_v4 = vld [vmem:[#allocation2 + $0x550] sm:$0xff]   ;;  %v2985_v5 = vshll.u32 %v2204_v62, 16 }
  0xca   : > { %4456 = vmatprep.subr.bf16.mxu0 %v4838_v6  ;;  %4478 = vmatprep.subr.bf16.mxu1 %v4839_v3  ;;  %v4871_v6 = vld [vmem:[#allocation2 + $0x5d0] sm:$0xff]  }
  0xcb   : > { %v4872_v3 = vld [vmem:[#allocation2 + $0x510] sm:$0xff]  }
  0xcd   : > { %4457 = vmatpush3.bf16.msra.mxu0 %v4840_v9  ;;  %4479 = vmatpush3.bf16.msra.mxu1 %v4841_v36  ;;  %v4873_v9 = vld [vmem:[#allocation2 + $0x590] sm:$0xff]   ;;  %v2979_v36 = vcombine.high %v5432_v16, %v5441_v22  ;;  %v4880_v16 = vld [vmem:[#allocation2 + $0x520] sm:$0xff]   ;;  %v4883_v22 = vld [vmem:[#allocation2 + $0x5e8] sm:$0xff]  }
  0xce   : > { %4458 = vmatprep.subr.bf16.mxu0 %v4842_v12  ;;  %4480 = vmatprep.subr.bf16.mxu1 %v4843_v8  ;;  %v2984_v12 = vrot.slane %v2982_v43, 6  ;;  %v4874_v8 = vld [vmem:[#allocation2 + $0x558] sm:$0xff]  }
  0xd1   : > { %4459 = vmatpush3.bf16.msra.mxu0 %v4844_v10  ;;  %4481 = vmatpush3.bf16.msra.mxu1 %v4845_v11  ;;  %v2987_v10 = vrot.slane %v2985_v5, 7  ;;  %v4875_v11 = vld [vmem:[#allocation2 + $0x5d8] sm:$0xff]  }
  0xd2   : > { %4460 = vmatprep.subr.bf16.mxu0 %v4846_v13  ;;  %4482 = vmatprep.subr.bf16.mxu1 %v4847_v51  ;;  %v4876_v13 = vld [vmem:[#allocation2 + $0x518] sm:$0xff]  }
  0xd3   : > { %v4877_v51 = vld [vmem:[#allocation2 + $0x598] sm:$0xff]  }
  0xd5   : > { %4461 = vmatpush3.bf16.msra.mxu0 %v4848_v52  ;;  %4483 = vmatpush3.bf16.msra.mxu1 %v4849_v57  ;;  %v2991_v52 = vshll.u32 %v2979_v36, 16  ;;  %v4878_v57 = vld [vmem:[#allocation2 + $0x560] sm:$0xff]   ;;  %v3175_v36 = vcombine.high %v5344_v29, %v5352_v37 }
  0xd6   : > { %4462 = vmatprep.subr.bf16.mxu0 %v4850_v60  ;;  %4484 = vmatprep.subr.bf16.mxu1 %v4851_v14  ;;  %v4879_v60 = vld [vmem:[#allocation2 + $0x5e0] sm:$0xff]   ;;  %v2988_v14 = vor.u32 %v2987_v10, %v2984_v12 }
  0xd7   : > { %v2993_v21 = vrot.slane %v2991_v52, 7  ;;  %v4894_v12 = vld [vmem:[#allocation2 + $0x640] sm:$0xff]  }
  0xd8   : > { %v2989_v23 = vrot.slane %v2988_v14, 2  ;;  %v4898_v14 = vld [vmem:[#allocation2 + $0x648] sm:$0xff]  }
  0xd9   : > { %4463 = vmatpush3.bf16.msra.mxu0 %v4852_v35  ;;  %4485 = vmatpush3.bf16.msra.mxu1 %v4853_v41  ;;  %v4885_v35 = vld [vmem:[#allocation2 + $0x5a8] sm:$0xff]   ;;  %v4960_v41 = vld.sshfl [vmem:[%s5214_s11 + $0x70] sm:$0x5f pattern:$0x76325410] }
  0xda   : > { %4464 = vmatprep.subr.bf16.mxu0 %v4854_v42  ;;  %4486 = vmatprep.subr.bf16.mxu1 %v4855_v40  ;;  %v4136_v42 = vcombine.low %v4960_v41, %v4128_v30  ;;  %v4129_v40 = vld.sshfl [vmem:[%s5429_s17 + $0x18] sm:$0x5f pattern:$0x76325410]  ;;  %v4904_v41 = vld [vmem:[#allocation2 + $0x610] sm:$0xff]   ;;  %s4994_s17 = sshll.u32 %s5078_s16, 4  ;;  %s4995_s17 = int_to_ptr.vmem [resolvable:$false] %s4994_s17 }
  0xdb   : > { %v2980_v47 = vcombine.high %v4128_v30, %v4129_v40  ;;  %s4996_s25 = scalar_lea.vmem %s4995_s17, 512  ;;  %p4997_p1 = scmp.lt.s32.totalorder %s5558_s8, %s4995_s17 }
  0xdc   : > { %v2409_v15 = vrot.slane %v4136_v42, %v5276_v26  ;;  %v4905_v42 = vld [vmem:[#allocation2 + $0x690] sm:$0xff]   ;;  %p4998_p3 = scmp.lt.s32.totalorder %s4996_s25, %s4990_s15 }
  0xdd   : > { %4465 = vmatpush3.bf16.msra.mxu0 %v4856_v46  ;;  %4487 = vmatpush3.bf16.msra.mxu1 %v4857_v33  ;;  %v4961_v46 = vld.sshfl [vmem:[%s5214_s11 + $0x78] sm:$0x5f pattern:$0x76325410]  ;;  %v3005_v18 = vshll.u32 %v2980_v47, 16  ;;  %v4912_v47 = vld [vmem:[#allocation2 + $0x620] sm:$0xff]  }
  0xde   : > { %4466 = vmatprep.subr.bf16.mxu0 %v4858_v39  ;;  %4488 = vmatprep.subr.bf16.mxu1 %v4859_v44  ;;  %v4137_v33 = vcombine.low %v4961_v46, %v4129_v40  ;;  %v2418_v53 = vcombine.high %v5461_v34, %v2409_v15  ;;  %v4910_v46 = vld [vmem:[#allocation2 + $0x660] sm:$0xff]   ;;  %p4999_p5 = por %p4998_p3, %p4997_p1 }
  0xe0   : > { %v2416_v39 = vrot.slane %v4137_v33, %v5276_v26  ;;  %v4911_v33 = vld [vmem:[#allocation2 + $0x6e0] sm:$0xff]   ;;  %p5000_p6 = pnand %p4999_p5, %p4993_p13 }
  0xe1   : > { %4467 = vmatpush3.bf16.msra.mxu0 %v4860_v59  ;;  %4489 = vmatpush3.bf16.msra.mxu1 %v4861_v50  ;;  %v2417_v50 = vcombine.low %v5461_v34, %v2409_v15  ;;  %v4906_v34 = vld [vmem:[#allocation2 + $0x658] sm:$0xff]   ;;  %v4914_v15 = vld [vmem:[#allocation2 + $0x668] sm:$0xff]  }
  0xe2   : > { %4496 = vmatprep.subr.bf16.mxu0 %v4862_v54  ;;  %4518 = vmatprep.subr.bf16.mxu1 %v4863_v55  ;;  %v2994_v54 = vsel %vm5266_vm6, %v2989_v23, %v2993_v21  ;;  %v2420_v55 = vcombine.high %v5468_v58, %v2416_v39  ;;  %v2419_v62 = vcombine.low %v5468_v58, %v2416_v39  ;;  %v4908_v58 = vld [vmem:[#allocation2 + $0x618] sm:$0xff]   ;;  %v4917_v39 = vld [vmem:[#allocation2 + $0x6a8] sm:$0xff]  }
  0xe3   : > { %v3140_v43 = vcombine.low %v5286_v31, %v2994_v54 }
  0xe4   : > { %2846 = vmatmul.mubr.bf16.vlgmr.msra.gmra.mrb[16].mxu0 %v2381_v45  ;;  %2887 = vmatmul.mubr.bf16.vlgmr.msra.gmra.mrb[16].mxu1 %v2383_v49  ;;  %v2219_v45 = vcombine.low %v4128_v30, %v4129_v40  ;;  %v4887_v49 = vld [vmem:[#allocation2 + $0x5f0] sm:$0xff]   ;;  %v4907_v40 = vld [vmem:[#allocation2 + $0x6d8] sm:$0xff]  }
  0xe5   : > { %4497 = vmatpush3.bf16.msra.mxu0 %v4864_v56  ;;  %4519 = vmatpush3.bf16.msra.mxu1 %v4865_v61  ;;  %v5493_v10 = vrot.slane %v3140_v43, %v5276_v26  ;;  %v4902_v30 = vld [vmem:[#allocation2 + $0x650] sm:$0xff]   ;;  %v4931_v43 = vld [vmem:[#allocation2 + $0x7c8] sm:$0xff]  }
  0xe6   : > { %4498 = vmatprep.subr.bf16.mxu0 %v4866_v63  ;;  %4520 = vmatprep.subr.bf16.mxu1 %v4867_v0  ;;  %v2996_v44 = vshrl.u32 %v2219_v45, 16  ;;  %v2999_v59 = vshll.u32 %v2219_v45, 16  ;;  %v4891_v63 = vld [vmem:[#allocation2 + $0x5f8] sm:$0xff]   ;;  %v3138_v0 = vcombine.low %v5274_v25, %v5280_v27 }
  0xe7   : > { %2927 = vmatprep.mubr.bf16.mxu0 %v2418_v53  ;;  %2968 = vmatprep.mubr.bf16.mxu1 %v2420_v55  ;;  %v4909_v45 = vld [vmem:[#allocation2 + $0x698] sm:$0xff]  }
  0xe8   : > { %v2998_v56 = vrot.slane %v2996_v44, 6  ;;  %v3001_v61 = vrot.slane %v2999_v59, 7  ;;  %v4918_v44 = vld [vmem:[#allocation2 + $0x670] sm:$0xff]   ;;  %v4922_v53 = vld [vmem:[#allocation2 + $0x678] sm:$0xff]  }
  0xe9   : > { %4499 = vmatpush3.bf16.msra.mxu0 %v4868_v1  ;;  %4521 = vmatpush3.bf16.msra.mxu1 %v4869_v2  ;;  %v3139_v1 = vcombine.high %v5274_v25, %v5280_v27  ;;  %v4892_v2 = vld [vmem:[#allocation2 + $0x538] sm:$0xff]   ;;  %v4895_v27 = vld [vmem:[#allocation2 + $0x6c0] sm:$0xff]   ;;  %v4919_v59 = vld [vmem:[#allocation2 + $0x6f0] sm:$0xff]  }
  0xea   : > { %4500 = vmatprep.subr.bf16.mxu0 %v4870_v4  ;;  %4522 = vmatprep.subr.bf16.mxu1 %v4871_v6  ;;  %v3141_v4 = vcombine.high %v5286_v31, %v2994_v54  ;;  %v3002_v5 = vor.u32 %v3001_v61, %v2998_v56  ;;  %v3007_v6 = vrot.slane %v3005_v18, 7  ;;  %v4896_v31 = vld [vmem:[#allocation2 + $0x600] sm:$0xff]   ;;  %v4920_v18 = vld [vmem:[#allocation2 + $0x630] sm:$0xff]   ;;  %v4924_v54 = vld [vmem:[#allocation2 + $0x638] sm:$0xff]  }
  0xeb   : > { %v4925_v55 = vld [vmem:[#allocation2 + $0x6b8] sm:$0xff]   ;;  %v4926_v56 = vld [vmem:[#allocation2 + $0x740] sm:$0xff]  }
  0xec   : > { %v3003_v25 = vrot.slane %v3002_v5, 2  ;;  %v4927_v61 = vld [vmem:[#allocation2 + $0x7c0] sm:$0xff]   ;;  %v4933_v5 = vld [vmem:[#allocation2 + $0x788] sm:$0xff]  }
  0xed   : > { %4501 = vmatpush3.bf16.msra.mxu0 %v4872_v3  ;;  %4523 = vmatpush3.bf16.msra.mxu1 %v4873_v9  ;;  %v4893_v3 = vld [vmem:[#allocation2 + $0x5b8] sm:$0xff]   ;;  %v3174_v9 = vcombine.low %v5344_v29, %v5352_v37  ;;  %v4897_v37 = vld [vmem:[#allocation2 + $0x680] sm:$0xff]  }
  0xee   : > { %4502 = vmatprep.subr.bf16.mxu0 %v4874_v8  ;;  %4524 = vmatprep.subr.bf16.mxu1 %v4875_v11  ;;  %v5490_v8 = vrot.slane %v3138_v0, %v5276_v26  ;;  %v5496_v11 = vrot.slane %v3139_v1, %v5276_v26  ;;  %v3008_v29 = vsel %vm5266_vm6, %v3003_v25, %v3007_v6  ;;  %v4929_v1 = vld [vmem:[#allocation2 + $0x780] sm:$0xff]   ;;  %v4934_v6 = vld [vmem:[#allocation2 + $0x750] sm:$0xff]   ;;  %v4939_v25 = vld [vmem:[#allocation2 + $0x7d8] sm:$0xff]  }
  0xef   : > { %v5505_v52 = vrot.slane %v3174_v9, %v5276_v26  ;;  %v4936_v9 = vld [vmem:[#allocation2 + $0x710] sm:$0xff]  }
  0xf0   : > { %v3171_v21 = vcombine.high %v5490_v8, %v5493_v10 }
  0xf1   : > { %4503 = vmatpush3.bf16.msra.mxu0 %v4876_v13  ;;  %4525 = vmatpush3.bf16.msra.mxu1 %v4877_v51  ;;  %v5499_v13 = vrot.slane %v3141_v4, %v5276_v26  ;;  %v3176_v51 = vcombine.low %v5362_v32, %v3008_v29  ;;  %v4932_v4 = vld [vmem:[#allocation2 + $0x708] sm:$0xff]  }
  0xf2   : > { %4504 = vmatprep.subr.bf16.mxu0 %v4878_v57  ;;  %4526 = vmatprep.subr.bf16.mxu1 %v4879_v60  ;;  %v3177_v57 = vcombine.high %v5362_v32, %v3008_v29  ;;  %v5509_v60 = vrot.slane %v3175_v36, %v5276_v26  ;;  %v4937_v36 = vld [vmem:[#allocation2 + $0x790] sm:$0xff]   ;;  %v4944_v29 = vld [vmem:[#allocation2 + $0x720] sm:$0xff]  }
  0xf3   : > { %v5512_v7 = vrot.slane %v3176_v51, %v5276_v26  ;;  %v3173_v32 = vcombine.high %v5496_v11, %v5499_v13  ;;  %v3172_v0 = vcombine.low %v5496_v11, %v5499_v13 }
  0xf5   : > { %4505 = vmatpush3.bf16.msra.mxu0 %v4880_v16  ;;  %4527 = vmatpush3.bf16.msra.mxu1 %v4881_v17  ;;  %v4899_v16 = vld [vmem:[#allocation2 + $0x6c8] sm:$0xff]   ;;  %v5515_v17 = vrot.slane %v3177_v57, %v5276_v26  ;;  %v3207_v23 = vcombine.high %v5505_v52, %v5512_v7  ;;  %v3206_v26 = vcombine.low %v5505_v52, %v5512_v7  ;;  %v4945_v57 = vld [vmem:[#allocation2 + $0x7a0] sm:$0xff]  }
  0xf6   : > { %4506 = vmatprep.subr.bf16.mxu0 %v4882_v20  ;;  %4528 = vmatprep.subr.bf16.mxu1 %v4883_v22  ;;  %v4900_v20 = vld [vmem:[#allocation2 + $0x608] sm:$0xff]  }
  0xf7   : > { %v4901_v22 = vld [vmem:[#allocation2 + $0x688] sm:$0xff]  }
  0xf9   : > { %4507 = vmatpush3.bf16.msra.mxu0 %v4884_v24  ;;  %4529 = vmatpush3.bf16.msra.mxu1 %v4885_v35  ;;  %v3209_v24 = vcombine.high %v5509_v60, %v5515_v17  ;;  %v3208_v35 = vcombine.low %v5509_v60, %v5515_v17 }
  0xfa   : > { %4508 = vmatprep.subr.bf16.mxu0 %v4886_v38  ;;  %4530 = vmatprep.subr.bf16.mxu1 %v4887_v49  ;;  %v4903_v38 = vld [vmem:[#allocation2 + $0x6d0] sm:$0xff]   ;;  %v4913_v49 = vld [vmem:[#allocation2 + $0x6a0] sm:$0xff]  }
  0xfd   : > { %4509 = vmatpush3.bf16.msra.mxu0 %v4888_v19  ;;  %4531 = vmatpush3.bf16.msra.mxu1 %v4889_v48  ;;  %v4915_v19 = vld [vmem:[#allocation2 + $0x6e8] sm:$0xff]  }
  0xfe   : > { %4510 = vmatprep.subr.bf16.mxu0 %v4890_v28  ;;  %4532 = vmatprep.subr.bf16.mxu1 %v4891_v63  ;;  %v4916_v48 = vld [vmem:[#allocation2 + $0x628] sm:$0xff]   ;;  %v4921_v28 = vld [vmem:[#allocation2 + $0x6b0] sm:$0xff]   ;;  %v3170_v63 = vcombine.low %v5490_v8, %v5493_v10  ;;  %v4941_v8 = vld [vmem:[#allocation2 + $0x798] sm:$0xff]  }
  0xff   : > { %v4943_v10 = vld [vmem:[#allocation2 + $0x7e0] sm:$0xff]  }
 0x101   : > { %4511 = vmatpush3.bf16.msra.mxu0 %v4892_v2  ;;  %4533 = vmatpush3.bf16.msra.mxu1 %v4893_v3  ;;  %v4930_v2 = vld [vmem:[#allocation2 + $0x748] sm:$0xff]   ;;  %v4935_v3 = vld [vmem:[#allocation2 + $0x7d0] sm:$0xff]  }
 0x102   : > { %4540 = vmatprep.subr.bf16.mxu0 %v4894_v12  ;;  %4562 = vmatprep.subr.bf16.mxu1 %v4895_v27  ;;  %v4938_v12 = vld [vmem:[#allocation2 + $0x758] sm:$0xff]  }
 0x103   : > { %v4940_v27 = vld [vmem:[#allocation2 + $0x718] sm:$0xff]  }
 0x104   : > { %2928 = vmatmul.mubr.bf16.vlgmr.msra.gmra.mrb[20].mxu0 %v2417_v50  ;;  %2969 = vmatmul.mubr.bf16.vlgmr.msra.gmra.mrb[20].mxu1 %v2419_v62  ;;  %v4923_v50 = vld [vmem:[#allocation2 + $0x6f8] sm:$0xff]   ;;  %v4928_v62 = vld [vmem:[#allocation2 + $0x700] sm:$0xff]  }
 0x105   : > { %4541 = vmatpush3.bf16.msra.mxu0 %v4896_v31  ;;  %4563 = vmatpush3.bf16.msra.mxu1 %v4897_v37  ;;  %v4942_v31 = vld [vmem:[#allocation2 + $0x760] sm:$0xff]  }
 0x106   : > { %4542 = vmatprep.subr.bf16.mxu0 %v4898_v14  ;;  %4564 = vmatprep.subr.bf16.mxu1 %v4899_v16 }
 0x107   : > { %3634 = vmatprep.mubr.bf16.mxu0 %v3171_v21  ;;  %3675 = vmatprep.mubr.bf16.mxu1 %v3173_v32 }
 0x109   : > { %4543 = vmatpush3.bf16.msra.mxu0 %v4900_v20  ;;  %4565 = vmatpush3.bf16.msra.mxu1 %v4901_v22  ;;  %v4946_v20 = vld [vmem:[#allocation2 + $0x768] sm:$0xff]  }
 0x10a   : > { %4544 = vmatprep.subr.bf16.mxu0 %v4902_v30  ;;  %4566 = vmatprep.subr.bf16.mxu1 %v4903_v38  ;;  %v4947_v30 = vld [vmem:[#allocation2 + $0x7e8] sm:$0xff]  }
 0x10d   : > { %4545 = vmatpush3.bf16.msra.mxu0 %v4904_v41  ;;  %4567 = vmatpush3.bf16.msra.mxu1 %v4905_v42 }
 0x10e   : > { %4546 = vmatprep.subr.bf16.mxu0 %v4906_v34  ;;  %4568 = vmatprep.subr.bf16.mxu1 %v4907_v40  ;;  %v4948_v34 = vld [vmem:[#allocation2 + $0x728] sm:$0xff]  }
 0x10f   : > { %v4949_v40 = vld [vmem:[#allocation2 + $0x7a8] sm:$0xff]  }
 0x111   : > { %4547 = vmatpush3.bf16.msra.mxu0 %v4908_v58  ;;  %4569 = vmatpush3.bf16.msra.mxu1 %v4909_v45  ;;  %v4950_v58 = vld [vmem:[#allocation2 + $0x770] sm:$0xff]  }
 0x112   : > { %4548 = vmatprep.subr.bf16.mxu0 %v4910_v46  ;;  %4570 = vmatprep.subr.bf16.mxu1 %v4911_v33  ;;  %v4951_v45 = vld [vmem:[#allocation2 + $0x7f0] sm:$0xff]  }
 0x113   : > { %v4952_v46 = vld [vmem:[#allocation2 + $0x730] sm:$0xff]  }
 0x114   : > { %v4953_v33 = vld [vmem:[#allocation2 + $0x7b0] sm:$0xff]  }
 0x115   : > { %4549 = vmatpush3.bf16.msra.mxu0 %v4912_v47  ;;  %4571 = vmatpush3.bf16.msra.mxu1 %v4913_v49  ;;  %v4954_v47 = vld [vmem:[#allocation2 + $0x778] sm:$0xff]  }
 0x116   : > { %4550 = vmatprep.subr.bf16.mxu0 %v4914_v15  ;;  %4572 = vmatprep.subr.bf16.mxu1 %v4915_v19  ;;  %v4955_v49 = vld [vmem:[#allocation2 + $0x7f8] sm:$0xff]  }
 0x117   : > { %v4956_v15 = vld [vmem:[#allocation2 + $0x738] sm:$0xff]  }
 0x118   : > { %v4957_v19 = vld [vmem:[#allocation2 + $0x7b8] sm:$0xff]  }
 0x119   : > { %4551 = vmatpush3.bf16.msra.mxu0 %v4916_v48  ;;  %4573 = vmatpush3.bf16.msra.mxu1 %v4917_v39 }
 0x11a   : > { %4552 = vmatprep.subr.bf16.mxu0 %v4918_v44  ;;  %4574 = vmatprep.subr.bf16.mxu1 %v4919_v59 }
 0x11d   : > { %4553 = vmatpush3.bf16.msra.mxu0 %v4920_v18  ;;  %4575 = vmatpush3.bf16.msra.mxu1 %v4921_v28 }
 0x11e   : > { %4554 = vmatprep.subr.bf16.mxu0 %v4922_v53  ;;  %4576 = vmatprep.subr.bf16.mxu1 %v4923_v50 }
 0x121   : > { %4555 = vmatpush3.bf16.msra.mxu0 %v4924_v54  ;;  %4577 = vmatpush3.bf16.msra.mxu1 %v4925_v55 }
 0x122   : > { %4584 = vmatprep.subr.bf16.mxu0 %v4926_v56  ;;  %4606 = vmatprep.subr.bf16.mxu1 %v4927_v61 }
 0x124   : > { %3635 = vmatmul.mubr.bf16.vlgmr.msra.gmra.mrb[24].mxu0 %v3170_v63  ;;  %3676 = vmatmul.mubr.bf16.vlgmr.msra.gmra.mrb[24].mxu1 %v3172_v0 }
 0x125   : > { %4585 = vmatpush3.bf16.msra.mxu0 %v4928_v62  ;;  %4607 = vmatpush3.bf16.msra.mxu1 %v4929_v1 }
 0x126   : > { %4586 = vmatprep.subr.bf16.mxu0 %v4930_v2  ;;  %4608 = vmatprep.subr.bf16.mxu1 %v4931_v43 }
 0x127   : > { %3716 = vmatprep.mubr.bf16.mxu0 %v3207_v23  ;;  %3757 = vmatprep.mubr.bf16.mxu1 %v3209_v24 }
 0x129   : > { %4587 = vmatpush3.bf16.msra.mxu0 %v4932_v4  ;;  %4609 = vmatpush3.bf16.msra.mxu1 %v4933_v5 }
 0x12a   : > { %4588 = vmatprep.subr.bf16.mxu0 %v4934_v6  ;;  %4610 = vmatprep.subr.bf16.mxu1 %v4935_v3 }
 0x12d   : > { %4589 = vmatpush3.bf16.msra.mxu0 %v4936_v9  ;;  %4611 = vmatpush3.bf16.msra.mxu1 %v4937_v36 }
 0x12e   : > { %4590 = vmatprep.subr.bf16.mxu0 %v4938_v12  ;;  %4612 = vmatprep.subr.bf16.mxu1 %v4939_v25 }
 0x131   : > { %4591 = vmatpush3.bf16.msra.mxu0 %v4940_v27  ;;  %4613 = vmatpush3.bf16.msra.mxu1 %v4941_v8 }
 0x132   : > { %v4292_v11 = vpop.f32.mrb[0].mxu0  ;;  %v4314_v13 = vpop.f32.mrb[0].mxu1  ;;  %4592 = vmatprep.subr.bf16.mxu0 %v4942_v31  ;;  %4614 = vmatprep.subr.bf16.mxu1 %v4943_v10 }
 0x133   : > { %v4293_v37 = vpop.f32.mrb[1].mxu0  ;;  %v4315_v51 = vpop.f32.mrb[1].mxu1 }
 0x134   : > { %v4294_v14 = vadd.f32 %v4293_v37, %v4292_v11  ;;  %v4316_v16 = vadd.f32 %v4315_v51, %v4314_v13  ;;  %v4295_v21 = vpop.f32.mrb[2].mxu0  ;;  %v4317_v32 = vpop.f32.mrb[2].mxu1 }
 0x135   : > { %v4296_v22 = vpop.f32.mrb[3].mxu0  ;;  %v4318_v23 = vpop.f32.mrb[3].mxu1  ;;  %4593 = vmatpush3.bf16.msra.mxu0 %v4944_v29  ;;  %4615 = vmatpush3.bf16.msra.mxu1 %v4945_v57 }
 0x136   : > { %v1470_v24 = vadd.f32 %v4316_v16, %v4294_v14  ;;  %v4297_v38 = vadd.f32 %v4296_v22, %v4295_v21  ;;  %v4319_v41 = vadd.f32 %v4318_v23, %v4317_v32  ;;  %4594 = vmatprep.subr.bf16.mxu0 %v4946_v20  ;;  %4616 = vmatprep.subr.bf16.mxu1 %v4947_v30 }
 0x138   : > { %v1473_v42 = vadd.f32 %v4319_v41, %v4297_v38 }
 0x139   : > { %4595 = vmatpush3.bf16.msra.mxu0 %v4948_v34  ;;  %4617 = vmatpush3.bf16.msra.mxu1 %v4949_v40 }
 0x13a   : > { %4596 = vmatprep.subr.bf16.mxu0 %v4950_v58  ;;  %4618 = vmatprep.subr.bf16.mxu1 %v4951_v45 }
 0x13d   : > { %4597 = vmatpush3.bf16.msra.mxu0 %v4952_v46  ;;  %4619 = vmatpush3.bf16.msra.mxu1 %v4953_v33 }
 0x13e   : > { %4598 = vmatprep.subr.bf16.mxu0 %v4954_v47  ;;  %4620 = vmatprep.subr.bf16.mxu1 %v4955_v49 }
 0x141   : > { %4599 = vmatpush3.bf16.msra.mxu0 %v4956_v15  ;;  %4621 = vmatpush3.bf16.msra.mxu1 %v4957_v19 }
 0x144   : > { %3717 = vmatmul.mubr.bf16.vlgmr.msra.gmra.mrb[28].mxu0 %v3206_v26  ;;  %3758 = vmatmul.mubr.bf16.vlgmr.msra.gmra.mrb[28].mxu1 %v3208_v35 }
 0x157   : > { %v4336_v48 = vpop.f32.mrb[4].mxu0  ;;  %v4358_v39 = vpop.f32.mrb[4].mxu1 }
 0x158   : > { %v4337_v44 = vpop.f32.mrb[5].mxu0  ;;  %v4359_v59 = vpop.f32.mrb[5].mxu1 }
 0x159   : > { %v4338_v18 = vadd.f32 %v4337_v44, %v4336_v48  ;;  %v4360_v28 = vadd.f32 %v4359_v59, %v4358_v39  ;;  %v4339_v53 = vpop.f32.mrb[6].mxu0  ;;  %v4361_v50 = vpop.f32.mrb[6].mxu1 }
 0x15a   : > { %v4340_v54 = vpop.f32.mrb[7].mxu0  ;;  %v4362_v55 = vpop.f32.mrb[7].mxu1 }
 0x15b   : > { %v1511_v56 = vadd.f32 %v4338_v18, %v1470_v24  ;;  %v4341_v61 = vadd.f32 %v4340_v54, %v4339_v53  ;;  %v4363_v62 = vadd.f32 %v4362_v55, %v4361_v50 }
 0x15d   : > { %v1552_v63 = vadd.f32 %v4360_v28, %v1511_v56  ;;  %v1514_v52 = vadd.f32 %v4341_v61, %v1473_v42 }
 0x15f   : > { %v1555_v7 = vadd.f32 %v4363_v62, %v1514_v52 }
 0x177   : > { %v4380_v26 = vpop.f32.mrb[8].mxu0  ;;  %v4402_v0 = vpop.f32.mrb[8].mxu1 }
 0x178   : > { %v4381_v60 = vpop.f32.mrb[9].mxu0  ;;  %v4403_v17 = vpop.f32.mrb[9].mxu1 }
 0x179   : > { %v4382_v35 = vadd.f32 %v4381_v60, %v4380_v26  ;;  %v4404_v1 = vadd.f32 %v4403_v17, %v4402_v0  ;;  %v4383_v2 = vpop.f32.mrb[10].mxu0  ;;  %v4405_v43 = vpop.f32.mrb[10].mxu1 }
 0x17a   : > { %v4384_v4 = vpop.f32.mrb[11].mxu0  ;;  %v4406_v5 = vpop.f32.mrb[11].mxu1 }
 0x17b   : > { %v2057_v6 = vadd.f32 %v4382_v35, %v1552_v63  ;;  %v4385_v3 = vadd.f32 %v4384_v4, %v4383_v2  ;;  %v4407_v9 = vadd.f32 %v4406_v5, %v4405_v43 }
 0x17d   : > { %v2098_v36 = vadd.f32 %v4404_v1, %v2057_v6  ;;  %v2060_v12 = vadd.f32 %v4385_v3, %v1555_v7 }
 0x17f   : > { %v2101_v25 = vadd.f32 %v4407_v9, %v2060_v12 }
 0x197   : > { %v4424_v27 = vpop.f32.mrb[12].mxu0  ;;  %v4446_v8 = vpop.f32.mrb[12].mxu1 }
 0x198   : > { %v4425_v31 = vpop.f32.mrb[13].mxu0  ;;  %v4447_v10 = vpop.f32.mrb[13].mxu1 }
 0x199   : > { %v4426_v11 = vadd.f32 %v4425_v31, %v4424_v27  ;;  %v4448_v13 = vadd.f32 %v4447_v10, %v4446_v8  ;;  %v4427_v29 = vpop.f32.mrb[14].mxu0  ;;  %v4449_v37 = vpop.f32.mrb[14].mxu1 }
 0x19a   : > { %v4428_v51 = vpop.f32.mrb[15].mxu0  ;;  %v4450_v57 = vpop.f32.mrb[15].mxu1 }
 0x19b   : > { %v2139_v14 = vadd.f32 %v4426_v11, %v2098_v36  ;;  %v4429_v16 = vadd.f32 %v4428_v51, %v4427_v29  ;;  %v4451_v20 = vadd.f32 %v4450_v57, %v4449_v37 }
 0x19d   : > { %v2180_v21 = vadd.f32 %v4448_v13, %v2139_v14  ;;  %v2142_v32 = vadd.f32 %v4429_v16, %v2101_v25 }
 0x19f   : > { %v2183_v22 = vadd.f32 %v4451_v20, %v2142_v32 }
 0x1b7   : > { %v4468_v23 = vpop.f32.mrb[16].mxu0  ;;  %v4490_v24 = vpop.f32.mrb[16].mxu1 }
 0x1b8   : > { %v4469_v30 = vpop.f32.mrb[17].mxu0  ;;  %v4491_v38 = vpop.f32.mrb[17].mxu1 }
 0x1b9   : > { %v4470_v41 = vadd.f32 %v4469_v30, %v4468_v23  ;;  %v4492_v42 = vadd.f32 %v4491_v38, %v4490_v24  ;;  %v4471_v34 = vpop.f32.mrb[18].mxu0  ;;  %v4493_v40 = vpop.f32.mrb[18].mxu1  ;;  %v4267_v23 = vld [vmem:[%s5610_s4] ss:$0 sm:$0xff] }
 0x1ba   : > { %v4472_v58 = vpop.f32.mrb[19].mxu0  ;;  %v4494_v45 = vpop.f32.mrb[19].mxu1 }
 0x1bb   : > { %v2889_v46 = vadd.f32 %v4492_v42, %v4470_v41  ;;  %v4473_v33 = vadd.f32 %v4472_v58, %v4471_v34  ;;  %v4495_v47 = vadd.f32 %v4494_v45, %v4493_v40 }
 0x1bd   : > { %v2892_v49 = vadd.f32 %v4495_v47, %v4473_v33 }
 0x1d7   : > { %v4512_v15 = vpop.f32.mrb[20].mxu0  ;;  %v4534_v19 = vpop.f32.mrb[20].mxu1 }
 0x1d8   : > { %v4513_v48 = vpop.f32.mrb[21].mxu0  ;;  %v4535_v39 = vpop.f32.mrb[21].mxu1 }
 0x1d9   : > { %v4514_v44 = vadd.f32 %v4513_v48, %v4512_v15  ;;  %v4536_v59 = vadd.f32 %v4535_v39, %v4534_v19  ;;  %v4515_v18 = vpop.f32.mrb[22].mxu0  ;;  %v4537_v28 = vpop.f32.mrb[22].mxu1 }
 0x1da   : > { %v4516_v53 = vpop.f32.mrb[23].mxu0  ;;  %v4538_v50 = vpop.f32.mrb[23].mxu1 }
 0x1db   : > { %v2930_v54 = vadd.f32 %v4514_v44, %v2889_v46  ;;  %v4517_v55 = vadd.f32 %v4516_v53, %v4515_v18  ;;  %v4539_v56 = vadd.f32 %v4538_v50, %v4537_v28 }
 0x1dd   : > { %v2971_v61 = vadd.f32 %v4536_v59, %v2930_v54  ;;  %v2933_v62 = vadd.f32 %v4517_v55, %v2892_v49 }
 0x1df   : > { %v2977_v63 = vadd.f32 %v2971_v61, %v2180_v21  ;;  %v2974_v52 = vadd.f32 %v4539_v56, %v2933_v62  ;;  %v4266_v21 = vld [vmem:[%s5609_s3] ss:$0 sm:$0xff] }
 0x1e1   : > { %v2978_v7 = vadd.f32 %v2974_v52, %v2183_v22 }
 0x1f7   : > { %v4556_v26 = vpop.f32.mrb[24].mxu0  ;;  %v4578_v0 = vpop.f32.mrb[24].mxu1 }
 0x1f8   : > { %v4557_v60 = vpop.f32.mrb[25].mxu0  ;;  %v4579_v17 = vpop.f32.mrb[25].mxu1 }
 0x1f9   : > { %v4558_v35 = vadd.f32 %v4557_v60, %v4556_v26  ;;  %v4580_v1 = vadd.f32 %v4579_v17, %v4578_v0  ;;  %v4559_v2 = vpop.f32.mrb[26].mxu0  ;;  %v4581_v43 = vpop.f32.mrb[26].mxu1 }
 0x1fa   : > { %v4560_v4 = vpop.f32.mrb[27].mxu0  ;;  %v4582_v5 = vpop.f32.mrb[27].mxu1 }
 0x1fb   : > { %v3678_v6 = vadd.f32 %v4580_v1, %v4558_v35  ;;  %v4561_v3 = vadd.f32 %v4560_v4, %v4559_v2  ;;  %v4583_v9 = vadd.f32 %v4582_v5, %v4581_v43 }
 0x1fd   : > { %v3681_v36 = vadd.f32 %v4583_v9, %v4561_v3 }
 0x217   : > { %v4600_v12 = vpop.f32.mrb[28].mxu0  ;;  %v4622_v25 = vpop.f32.mrb[28].mxu1 }
 0x218   : > { %v4601_v27 = vpop.f32.mrb[29].mxu0  ;;  %v4623_v8 = vpop.f32.mrb[29].mxu1 }
 0x219   : > { %v4602_v31 = vadd.f32 %v4601_v27, %v4600_v12  ;;  %v4624_v10 = vadd.f32 %v4623_v8, %v4622_v25  ;;  %v4603_v11 = vpop.f32.mrb[30].mxu0  ;;  %v4625_v13 = vpop.f32.mrb[30].mxu1 }
 0x21a   : > { %v4604_v29 = vpop.f32.mrb[31].mxu0  ;;  %v4626_v37 = vpop.f32.mrb[31].mxu1 }
 0x21b   : > { %v3719_v51 = vadd.f32 %v4602_v31, %v3678_v6  ;;  %v4605_v57 = vadd.f32 %v4604_v29, %v4603_v11  ;;  %v4627_v14 = vadd.f32 %v4626_v37, %v4625_v13 }
 0x21d   : > { %v3760_v16 = vadd.f32 %v4624_v10, %v3719_v51  ;;  %v3722_v20 = vadd.f32 %v4605_v57, %v3681_v36 }
 0x21f   : > { %v3766_v32 = vadd.f32 %v3760_v16, %v2977_v63  ;;  %v3763_v22 = vadd.f32 %v4627_v14, %v3722_v20 }
 0x221   : > { %v3775_v24 = vmul.f32 %v4266_v21, %v3766_v32  ;;  %v3767_v30 = vadd.f32 %v3763_v22, %v2978_v7 }
 0x223   : > { %v3784_v38 = vadd.f32 %v4267_v23, %v3775_v24  ;;  %v3776_v41 = vmul.f32 %v4266_v21, %v3767_v30 }
 0x225   : > { %v3788_v42 = vcombine.high %v3784_v38, %v3784_v38  ;;  %v3792_v34 = vmax.f32 %v3784_v38, 0.0  ;;  %v3785_v40 = vadd.f32 %v4267_v23, %v3776_v41 }
 0x227   : > { %v3793_v58 = vmax.f32 %v3788_v42, 0.0  ;;  %3796 = vst [vmem:[%s347_s7] sm:$0xf] %v3792_v34  ;;  %v3789_v45 = vcombine.high %v3785_v40, %v3785_v40  ;;  %v3794_v46 = vmax.f32 %v3785_v40, 0.0 }
 0x229   : > { %3797 = vst [vmem:[%s347_s7 + $0x4] sm:$0xf] %v3793_v58  ;;  %v3795_v33 = vmax.f32 %v3789_v45, 0.0  ;;  %3798 = vst [vmem:[%s347_s7 + $0x8] sm:$0xf] %v3794_v46 }
 0x22b   : > { %3799 = vst [vmem:[%s347_s7 + $0xc] sm:$0xf] %v3795_v33 }
 0x22c   : > { %5003 = shalt.err (!%p5000_p6)
}
 0x22d   : > { %s5004_s24 = scalar_lea.hbm %s5556_s14, 256  ;;  %s5008_s9 = scalar_lea.hbm %s5611_s5, 512 }
 0x22e   : > { %p5005_p7 = scmp.ne.s32.totalorder %s5556_s14, %s5004_s24  ;;  %p5009_p0 = scmp.lt.u32.totalorder %s5556_s14, %s5611_s5 }
 0x22f   : > { %p5010_p2 = scmp.lt.u32.totalorder %s5008_s9, %s5004_s24  ;;  %p5012_p8 = scmp.lt.u32.totalorder %s5004_s24, %s5556_s14 }
 0x230   : > { %p5006_p9 = pnand %p5005_p7, %p5627_p10 }
 0x231   : > { %p5011_p4 = por %p5010_p2, %p5009_p0 }
 0x232   : > { %p5007_p12 = pneg %p5006_p9 }
 0x233   : > { %p5013_p11 = por %p5012_p8, %p5011_p4 }
 0x235   : > { %p5014_p13 = pnand %p5013_p11, %p5007_p12 }
 0x237   : > { %5017 = shalt.err (!%p5014_p13)
}
 0x238   : > { %s5079_s7 = smov 64   ;;  %s5080_s10 = smov 4  }
 0x239   : > { %4634 = dma.vmem_to_hbm [thread:$0]  (%p5627_p10), %s5558_s8, 256, %s5556_s14, %s5560_s21, %s5079_s7, %s5079_s7, %s5080_s10  }
 0x23a PF: > { %p4647_p1 = scmp.ge.s32.totalorder %s5072_s23, 2  ;;  %s3832_s11 = sand.u32 1, %s5052_s18  }
 0x23b   : > { %p5628_p3 = scmp.ne.s32.totalorder %s5617_s30, 0  ;;  %s3833_s15 = scalar_lea.sflag [#allocation4], %s3832_s11 }
 0x23d   : > { %p4641_p5 = pnand %p4647_p1, %p5628_p3 }
 0x23f   : > { %5047 = dma.done.wait (!%p4641_p5), %s3833_s15, 256  }
 0x240   : > { %5049 = vsyncadd (!%p4641_p5), %s3833_s15, 4294967040  ;;  %s19_s23 = sadd.s32 1, %s5072_s23   ;;  %s5629_s18 = smov %s5056_s19 }
 0x241   : > { %p16_p6 = scmp.ge.s32.totalorder %s19_s23, 4   ;;  %s5630_s19 = smov %s5060_s20 }
 0x242   : > { %s5631_s20 = smov %s5164_s6  ;;  %s5632_s21 = smov %s5068_s22 }
 0x243   : > { %s5633_s22 = smov %s5635_s26  ;;  %18 = sbr.rel (!%p16_p6) target bundleno = 5 (0x5), region = 93 }
 0x24a   :  { %3838 = vsyncpa [#allocation3], 1 }
 0x24b   :  { %3840 = vsyncpa [#allocation3 + $0x1], 1 }
 0x24c   :  { %3841 = vsyncpa [#allocation4], 1 }
 0x24d   :  { %3843 = vsyncpa [#allocation4 + $0x1], 1 }

</bundles_post_ra>
